<compile_context>
chip_gen: v6e
topology: v6e:2x2x1
jax: 0.10.0
libtpu: 0.0.40
codegen_flags: <defaults>
</compile_context>

<pallas_src>
import jax
import jax.numpy as jnp
from jax.experimental import pallas as pl
from jax.experimental.pallas import tpu as pltpu

TILE_B = 128          # preferred rows per grid step (MXU M dimension)
LANE = 128


def _round_up(x, m):
    return ((x + m - 1) // m) * m


def mlp_kernel(x_ref, w1_ref, b1_ref, w2_ref, b2_ref, w3_ref, b3_ref, o_ref):
    # Layer 1: (tile_b, 896) @ (896, 512) + (1, 512) -> ReLU
    h = jnp.dot(x_ref[...], w1_ref[...], preferred_element_type=jnp.float32)
    h = jnp.maximum(h + b1_ref[...], 0.0).astype(jnp.bfloat16)
    # Layer 2: (tile_b, 512) @ (512, 512) + (1, 512) -> ReLU
    h = jnp.dot(h, w2_ref[...], preferred_element_type=jnp.float32)
    h = jnp.maximum(h + b2_ref[...], 0.0).astype(jnp.bfloat16)
    # Layer 3: (tile_b, 512) @ (512, 128 padded) + (1, 128 padded)
    logits = jnp.dot(h, w3_ref[...], preferred_element_type=jnp.float32) + b3_ref[...]
    o_ref[...] = logits.astype(o_ref.dtype)


@jax.jit
def mlp_forward(x_nchw, params):
    """x_nchw: (B, 1, 28, 28) float32. Returns logits (B, 10) float32."""
    w1, b1, w2, b2, w3, b3 = params
    B = x_nchw.shape[0]
    x_flat = x_nchw.reshape(B, -1).astype(jnp.float32)           # nn.Flatten(): (B, 784)
    K = x_flat.shape[1]                                           # 784
    H = w1.shape[1]                                               # 512
    N = w3.shape[1]                                               # 10

    tile_b = min(TILE_B, _round_up(B, 8))                         # small batches -> small tile
    num_tiles = pl.cdiv(B, tile_b)
    B_pad = num_tiles * tile_b
    K_pad = _round_up(K, LANE)                                    # 896
    N_pad = LANE                                                  # 128

    # Zero-pad + cast to bf16 (f32 accumulation happens inside the kernel).
    x_p = jnp.zeros((B_pad, K_pad), jnp.bfloat16).at[:B, :K].set(x_flat.astype(jnp.bfloat16))
    w1_p = jnp.zeros((K_pad, H), jnp.bfloat16).at[:K, :].set(w1.astype(jnp.bfloat16))
    w2_p = w2.astype(jnp.bfloat16)
    w3_p = jnp.zeros((w3.shape[0], N_pad), jnp.bfloat16).at[:, :N].set(w3.astype(jnp.bfloat16))
    b1_p = b1.astype(jnp.float32)
    b2_p = b2.astype(jnp.float32)
    b3_p = jnp.zeros((1, N_pad), jnp.float32).at[:, :N].set(b3.astype(jnp.float32))

    flops = 2 * B_pad * (K_pad * H + H * H + H * N_pad)
    bytes_accessed = (x_p.size + w1_p.size + w2_p.size + w3_p.size) * 2 \
        + (b1_p.size + b2_p.size + b3_p.size) * 4 + B_pad * N_pad * 4

    out_padded = pl.pallas_call(
        mlp_kernel,
        out_shape=jax.ShapeDtypeStruct((B_pad, N_pad), jnp.float32),
        grid=(num_tiles,),
        in_specs=[
            pl.BlockSpec((tile_b, K_pad), lambda i: (i, 0)),      # x: tiled over batch
            pl.BlockSpec((K_pad, H), lambda i: (0, 0)),           # w1: resident
            pl.BlockSpec((1, H), lambda i: (0, 0)),               # b1: resident
            pl.BlockSpec((H, H), lambda i: (0, 0)),               # w2: resident
            pl.BlockSpec((1, H), lambda i: (0, 0)),               # b2: resident
            pl.BlockSpec((H, N_pad), lambda i: (0, 0)),           # w3: resident
            pl.BlockSpec((1, N_pad), lambda i: (0, 0)),           # b3: resident
        ],
        out_specs=pl.BlockSpec((tile_b, N_pad), lambda i: (i, 0)),
        compiler_params=pltpu.CompilerParams(
            dimension_semantics=("parallel",),
            vmem_limit_bytes=32 * 1024 * 1024,
        ),
        cost_estimate=pl.CostEstimate(
            flops=flops, transcendentals=0, bytes_accessed=bytes_accessed),
    )(x_p, w1_p, b1_p, w2_p, b2_p, w3_p, b3_p)

    return out_padded[:B, :N]


def init_params(key):
    """Deterministic init matching nn.Linear shapes (weights stored as (in, out))."""
    dims = [(28 * 28, 512), (512, 512), (512, 10)]
    params = []
    for i, (fan_in, fan_out) in enumerate(dims):
        kw, kb, key = jax.random.split(jax.random.fold_in(key, i), 3)
        bound = 1.0 / jnp.sqrt(fan_in)
        w = jax.random.uniform(kw, (fan_in, fan_out), jnp.float32, -bound, bound)
        b = jax.random.uniform(kb, (1, fan_out), jnp.float32, -bound, bound)
        params.extend([w, b])
    return tuple(params)


if __name__ == "__main__":
    key = jax.random.PRNGKey(0)
    k_x, k_p = jax.random.split(key)
    # Small MNIST-like batch: (B=2, C=1, H=28, W=28). At this size the kernel
    # is overhead-bound; the tiling/bf16 wins show up at B >~ 128.
    x = jax.random.normal(k_x, (2, 1, 28, 28), jnp.float32)
    params = init_params(k_p)

    logits = mlp_forward(x, params)
    jax.block_until_ready(logits)
    assert logits.shape == (2, 10) and logits.dtype == jnp.float32

    # Reference check in plain JAX (f32). bf16 inputs + f32 accumulation needs
    # a looser tolerance than a pure-f32 kernel.
    w1, b1, w2, b2, w3, b3 = params
    h = jnp.maximum(x.reshape(2, -1) @ w1 + b1, 0.0)
    h = jnp.maximum(h @ w2 + b2, 0.0)
    ref = h @ w3 + b3
    assert jnp.allclose(logits, ref, atol=5e-2, rtol=5e-2), (
        float(jnp.max(jnp.abs(logits - ref))))

    print("KERNEL_OK")
</pallas_src>

<mosaic_0001>
module attributes {stable_mosaic.version = 11 : i64} {
  func.func @mlp_kernel(%arg0: i32, %arg1: memref<8x896xbf16, #tpu.memory_space<vmem>>, %arg2: memref<896x512xbf16, #tpu.memory_space<vmem>>, %arg3: memref<1x512xf32, #tpu.memory_space<vmem>>, %arg4: memref<512x512xbf16, #tpu.memory_space<vmem>>, %arg5: memref<1x512xf32, #tpu.memory_space<vmem>>, %arg6: memref<512x128xbf16, #tpu.memory_space<vmem>>, %arg7: memref<1x128xf32, #tpu.memory_space<vmem>>, %arg8: memref<8x128xf32, #tpu.memory_space<vmem>>) attributes {dimension_semantics = [#tpu.dimension_semantics<parallel>], iteration_bounds = array<i64: 1>, scalar_prefetch = 0 : i64, scratch_operands = 0 : i64, tpu.core_type = #tpu.core_type<tc>, window_params = [{transform_indices = @transform_0, window_bounds = array<i64: 8, 896>}, {pipeline_mode = #tpu.pipeline_mode<synchronous>, transform_indices = @transform_1, window_bounds = array<i64: 896, 512>}, {pipeline_mode = #tpu.pipeline_mode<synchronous>, transform_indices = @transform_2, window_bounds = array<i64: 1, 512>}, {pipeline_mode = #tpu.pipeline_mode<synchronous>, transform_indices = @transform_3, window_bounds = array<i64: 512, 512>}, {pipeline_mode = #tpu.pipeline_mode<synchronous>, transform_indices = @transform_4, window_bounds = array<i64: 1, 512>}, {pipeline_mode = #tpu.pipeline_mode<synchronous>, transform_indices = @transform_5, window_bounds = array<i64: 512, 128>}, {pipeline_mode = #tpu.pipeline_mode<synchronous>, transform_indices = @transform_6, window_bounds = array<i64: 1, 128>}, {transform_indices = @transform_7, window_bounds = array<i64: 8, 128>}]} {
    %c0 = arith.constant 0 : index
    %c0_0 = arith.constant 0 : index
    %0 = vector.load %arg1[%c0, %c0_0] : memref<8x896xbf16, #tpu.memory_space<vmem>>, vector<8x896xbf16>
    %c0_1 = arith.constant 0 : index
    %c0_2 = arith.constant 0 : index
    %1 = vector.load %arg2[%c0_1, %c0_2] : memref<896x512xbf16, #tpu.memory_space<vmem>>, vector<896x512xbf16>
    %cst = arith.constant dense<0.000000e+00> : vector<8x512xf32>
    %2 = tpu.matmul %0, %1, %cst {dimension_numbers = #tpu.dot_dimension_numbers<[1], [0], [0], [1], [0, 0, 1, 1], [], []>} : vector<8x896xbf16>, vector<896x512xbf16>, vector<8x512xf32> -> vector<8x512xf32>
    %c0_3 = arith.constant 0 : index
    %c0_4 = arith.constant 0 : index
    %3 = vector.load %arg3[%c0_3, %c0_4] : memref<1x512xf32, #tpu.memory_space<vmem>>, vector<1x512xf32>
    %4 = vector.broadcast %3 : vector<1x512xf32> to vector<8x512xf32>
    %5 = arith.addf %2, %4 : vector<8x512xf32>
    %cst_5 = arith.constant 0.000000e+00 : f32
    %6 = vector.broadcast %cst_5 : f32 to vector<8x512xf32>
    %7 = arith.maximumf %5, %6 : vector<8x512xf32>
    %8 = arith.truncf %7 : vector<8x512xf32> to vector<8x512xbf16>
    %c0_6 = arith.constant 0 : index
    %c0_7 = arith.constant 0 : index
    %9 = vector.load %arg4[%c0_6, %c0_7] : memref<512x512xbf16, #tpu.memory_space<vmem>>, vector<512x512xbf16>
    %cst_8 = arith.constant dense<0.000000e+00> : vector<8x512xf32>
    %10 = tpu.matmul %8, %9, %cst_8 {dimension_numbers = #tpu.dot_dimension_numbers<[1], [0], [0], [1], [0, 0, 1, 1], [], []>} : vector<8x512xbf16>, vector<512x512xbf16>, vector<8x512xf32> -> vector<8x512xf32>
    %c0_9 = arith.constant 0 : index
    %c0_10 = arith.constant 0 : index
    %11 = vector.load %arg5[%c0_9, %c0_10] : memref<1x512xf32, #tpu.memory_space<vmem>>, vector<1x512xf32>
    %12 = vector.broadcast %11 : vector<1x512xf32> to vector<8x512xf32>
    %13 = arith.addf %10, %12 : vector<8x512xf32>
    %cst_11 = arith.constant 0.000000e+00 : f32
    %14 = vector.broadcast %cst_11 : f32 to vector<8x512xf32>
    %15 = arith.maximumf %13, %14 : vector<8x512xf32>
    %16 = arith.truncf %15 : vector<8x512xf32> to vector<8x512xbf16>
    %c0_12 = arith.constant 0 : index
    %c0_13 = arith.constant 0 : index
    %17 = vector.load %arg6[%c0_12, %c0_13] : memref<512x128xbf16, #tpu.memory_space<vmem>>, vector<512x128xbf16>
    %cst_14 = arith.constant dense<0.000000e+00> : vector<8x128xf32>
    %18 = tpu.matmul %16, %17, %cst_14 {dimension_numbers = #tpu.dot_dimension_numbers<[1], [0], [0], [1], [0, 0, 1, 1], [], []>} : vector<8x512xbf16>, vector<512x128xbf16>, vector<8x128xf32> -> vector<8x128xf32>
    %c0_15 = arith.constant 0 : index
    %c0_16 = arith.constant 0 : index
    %19 = vector.load %arg7[%c0_15, %c0_16] : memref<1x128xf32, #tpu.memory_space<vmem>>, vector<1x128xf32>
    %20 = vector.broadcast %19 : vector<1x128xf32> to vector<8x128xf32>
    %21 = arith.addf %18, %20 : vector<8x128xf32>
    %c0_17 = arith.constant 0 : index
    %c0_18 = arith.constant 0 : index
    %22 = vector.load %arg8[%c0_17, %c0_18] : memref<8x128xf32, #tpu.memory_space<vmem>>, vector<8x128xf32>
    tpu.vector_store %arg8[%c0_17, %c0_18], %21 {strides = array<i32>} : memref<8x128xf32, #tpu.memory_space<vmem>>, vector<8x128xf32>,
    return
  }
  func.func @transform_0(%arg0: i32) -> (i32, i32) {
    %c0_i32 = arith.constant 0 : i32
    %c0_i32_0 = arith.constant 0 : i32
    return %arg0, %c0_i32 : i32, i32
  }
  func.func @transform_1(%arg0: i32) -> (i32, i32) {
    %c0_i32 = arith.constant 0 : i32
    %c0_i32_0 = arith.constant 0 : i32
    %c0_i32_1 = arith.constant 0 : i32
    return %c0_i32, %c0_i32_0 : i32, i32
  }
  func.func @transform_2(%arg0: i32) -> (i32, i32) {
    %c0_i32 = arith.constant 0 : i32
    %c0_i32_0 = arith.constant 0 : i32
    %c0_i32_1 = arith.constant 0 : i32
    return %c0_i32, %c0_i32_0 : i32, i32
  }
  func.func @transform_3(%arg0: i32) -> (i32, i32) {
    %c0_i32 = arith.constant 0 : i32
    %c0_i32_0 = arith.constant 0 : i32
    %c0_i32_1 = arith.constant 0 : i32
    return %c0_i32, %c0_i32_0 : i32, i32
  }
  func.func @transform_4(%arg0: i32) -> (i32, i32) {
    %c0_i32 = arith.constant 0 : i32
    %c0_i32_0 = arith.constant 0 : i32
    %c0_i32_1 = arith.constant 0 : i32
    return %c0_i32, %c0_i32_0 : i32, i32
  }
  func.func @transform_5(%arg0: i32) -> (i32, i32) {
    %c0_i32 = arith.constant 0 : i32
    %c0_i32_0 = arith.constant 0 : i32
    %c0_i32_1 = arith.constant 0 : i32
    return %c0_i32, %c0_i32_0 : i32, i32
  }
  func.func @transform_6(%arg0: i32) -> (i32, i32) {
    %c0_i32 = arith.constant 0 : i32
    %c0_i32_0 = arith.constant 0 : i32
    %c0_i32_1 = arith.constant 0 : i32
    return %c0_i32, %c0_i32_0 : i32, i32
  }
  func.func @transform_7(%arg0: i32) -> (i32, i32) {
    %c0_i32 = arith.constant 0 : i32
    %c0_i32_0 = arith.constant 0 : i32
    return %arg0, %c0_i32 : i32, i32
  }
}

</mosaic_0001>

<bundles_post_ra>
// kernel: mlp_forward.1
= control target key start
LH: loop header
LB: loop body
LE: loop exit
PB: predicated region body
PF: predicated region fallthrough
CT: control target
= control target key end

     0   :  { %s5373_s1 = inlined_call_operand.vmem [shape: bf16[896,512], index: 1, kind: input, shape index: {}]   ;;  %s5374_s0 = inlined_call_operand.vmem [shape: bf16[8,896], index: 0, kind: input, shape index: {}]   ;;  %s5375_s3 = inlined_call_operand.vmem [shape: bf16[512,512], index: 3, kind: input, shape index: {}]   ;;  %s5376_s2 = inlined_call_operand.vmem [shape: f32[1,512], index: 2, kind: input, shape index: {}]   ;;  %s5377_s5 = inlined_call_operand.vmem [shape: bf16[512,128], index: 5, kind: input, shape index: {}]   ;;  %s5378_s4 = inlined_call_operand.vmem [shape: f32[1,512], index: 4, kind: input, shape index: {}]   ;;  %s5379_s6 = inlined_call_operand.vmem [shape: f32[1,128], index: 6, kind: input, shape index: {}]   ;;  %s5380_s7 = inlined_call_operand.vmem [shape: f32[8,128], index: 7, kind: output, shape index: {}]  }
   0x1   :  { %v3505_v0 = vld [vmem:[%s5373_s1 + $0xe4] ss:$16 sps:$4 sm:$0xff]   ;;  %v3509_v2 = vld [vmem:[%s5373_s1 + $0xe0] ss:$16 sps:$4 sm:$0xff]   ;;  %v28_v48 = vld [vmem:[%s5374_s0 + $0x8] sm:$0xff] }
   0x2   :  { %v3507_v1 = vld [vmem:[%s5373_s1 + $0x2e4] ss:$16 sps:$4 sm:$0xff]   ;;  %1422 = vmatprep.subr.bf16.mxu0 %v3505_v0  ;;  %v3510_v3 = vld [vmem:[%s5373_s1 + $0x2e0] ss:$16 sps:$4 sm:$0xff]   ;;  %v4265_v51 = vcombine.high %v28_v48, %v28_v48 }
   0x3   :  { %1463 = vmatprep.subr.bf16.mxu1 %v3507_v1  ;;  %v3511_v4 = vld [vmem:[%s5373_s1 + $0xc4] ss:$16 sps:$4 sm:$0xff]   ;;  %1423 = vmatpush1.bf16.msra.mxu0 %v3509_v2  ;;  %v3515_v6 = vld [vmem:[%s5373_s1 + $0xc0] ss:$16 sps:$4 sm:$0xff]  }
   0x4   :  { %1464 = vmatpush1.bf16.msra.mxu1 %v3510_v3  ;;  %v3513_v5 = vld [vmem:[%s5373_s1 + $0x2c4] ss:$16 sps:$4 sm:$0xff]   ;;  %1424 = vmatprep.subr.bf16.mxu0 %v3511_v4  ;;  %v3516_v7 = vld [vmem:[%s5373_s1 + $0x2c0] ss:$16 sps:$4 sm:$0xff]  }
   0x5   :  { %1465 = vmatprep.subr.bf16.mxu1 %v3513_v5  ;;  %v3517_v8 = vld [vmem:[%s5373_s1 + $0xa4] ss:$16 sps:$4 sm:$0xff]   ;;  %v3521_v10 = vld [vmem:[%s5373_s1 + $0xa0] ss:$16 sps:$4 sm:$0xff]   ;;  %1495 = vmatprep.mubr.bf16.mxu1 %v4265_v51 }
   0x6   :  { %v3519_v9 = vld [vmem:[%s5373_s1 + $0x2a4] ss:$16 sps:$4 sm:$0xff]   ;;  %v3522_v11 = vld [vmem:[%s5373_s1 + $0x2a0] ss:$16 sps:$4 sm:$0xff]  }
   0x7   :  { %1425 = vmatpush1.bf16.msra.mxu0 %v3515_v6  ;;  %v3523_v12 = vld [vmem:[%s5373_s1 + $0x84] ss:$16 sps:$4 sm:$0xff]   ;;  %v3527_v14 = vld [vmem:[%s5373_s1 + $0x80] ss:$16 sps:$4 sm:$0xff]  }
   0x8   :  { %1466 = vmatpush1.bf16.msra.mxu1 %v3516_v7  ;;  %1426 = vmatprep.subr.bf16.mxu0 %v3517_v8  ;;  %v3525_v13 = vld [vmem:[%s5373_s1 + $0x284] ss:$16 sps:$4 sm:$0xff]   ;;  %v3528_v15 = vld [vmem:[%s5373_s1 + $0x280] ss:$16 sps:$4 sm:$0xff]   ;;  %v4325_v7 = vcombine.low %v28_v48, %v28_v48  ;;  %v3665_v48 = vld [vmem:[%s5373_s1 + $0xcc] ss:$16 sps:$4 sm:$0xff]  }
   0x9   :  { %1467 = vmatprep.subr.bf16.mxu1 %v3519_v9  ;;  %v3529_v16 = vld [vmem:[%s5373_s1 + $0x64] ss:$16 sps:$4 sm:$0xff]   ;;  %v3533_v18 = vld [vmem:[%s5373_s1 + $0x60] ss:$16 sps:$4 sm:$0xff]  }
   0xa   :  { %v3531_v17 = vld [vmem:[%s5373_s1 + $0x264] ss:$16 sps:$4 sm:$0xff]   ;;  %v3534_v19 = vld [vmem:[%s5373_s1 + $0x260] ss:$16 sps:$4 sm:$0xff]  }
   0xb   :  { %1427 = vmatpush1.bf16.msra.mxu0 %v3521_v10  ;;  %v3535_v20 = vld [vmem:[%s5373_s1 + $0x44] ss:$16 sps:$4 sm:$0xff]   ;;  %v3539_v22 = vld [vmem:[%s5373_s1 + $0x40] ss:$16 sps:$4 sm:$0xff]  }
   0xc   :  { %1468 = vmatpush1.bf16.msra.mxu1 %v3522_v11  ;;  %1428 = vmatprep.subr.bf16.mxu0 %v3523_v12  ;;  %v3537_v21 = vld [vmem:[%s5373_s1 + $0x244] ss:$16 sps:$4 sm:$0xff]   ;;  %v3540_v23 = vld [vmem:[%s5373_s1 + $0x240] ss:$16 sps:$4 sm:$0xff]  }
   0xd   :  { %1469 = vmatprep.subr.bf16.mxu1 %v3525_v13  ;;  %v3541_v24 = vld [vmem:[%s5373_s1 + $0x24] ss:$16 sps:$4 sm:$0xff]   ;;  %v3545_v26 = vld [vmem:[%s5373_s1 + $0x20] ss:$16 sps:$4 sm:$0xff]  }
   0xe   :  { %v3543_v25 = vld [vmem:[%s5373_s1 + $0x224] ss:$16 sps:$4 sm:$0xff]   ;;  %v3546_v27 = vld [vmem:[%s5373_s1 + $0x220] ss:$16 sps:$4 sm:$0xff]  }
   0xf   :  { %1429 = vmatpush1.bf16.msra.mxu0 %v3527_v14  ;;  %v3547_v28 = vld [vmem:[%s5373_s1 + $0x4] ss:$16 sps:$4 sm:$0xff]   ;;  %v3551_v30 = vld [vmem:[%s5373_s1] ss:$16 sps:$4 sm:$0xff]  }
  0x10   :  { %1470 = vmatpush1.bf16.msra.mxu1 %v3528_v15  ;;  %1430 = vmatprep.subr.bf16.mxu0 %v3529_v16  ;;  %v3549_v29 = vld [vmem:[%s5373_s1 + $0x204] ss:$16 sps:$4 sm:$0xff]   ;;  %v3552_v31 = vld [vmem:[%s5373_s1 + $0x200] ss:$16 sps:$4 sm:$0xff]   ;;  %v4072_v16 = vmov 0  }
  0x11   :  { %1471 = vmatprep.subr.bf16.mxu1 %v3531_v17  ;;  %v3553_v32 = vld [vmem:[%s5373_s1 + $0x1e4] ss:$16 sps:$4 sm:$0xff]   ;;  %v3557_v34 = vld [vmem:[%s5373_s1 + $0x1e0] ss:$16 sps:$4 sm:$0xff]  }
  0x12   :  { %v3555_v33 = vld [vmem:[%s5373_s1 + $0x3e4] ss:$16 sps:$4 sm:$0xff]   ;;  %v3558_v35 = vld [vmem:[%s5373_s1 + $0x3e0] ss:$16 sps:$4 sm:$0xff]  }
  0x13   :  { %1431 = vmatpush1.bf16.msra.mxu0 %v3533_v18  ;;  %v3559_v36 = vld [vmem:[%s5373_s1 + $0x1c4] ss:$16 sps:$4 sm:$0xff]   ;;  %v3563_v38 = vld [vmem:[%s5373_s1 + $0x1c0] ss:$16 sps:$4 sm:$0xff]  }
  0x14   :  { %1472 = vmatpush1.bf16.msra.mxu1 %v3534_v19  ;;  %1432 = vmatprep.subr.bf16.mxu0 %v3535_v20  ;;  %v3561_v37 = vld [vmem:[%s5373_s1 + $0x3c4] ss:$16 sps:$4 sm:$0xff]   ;;  %v3564_v39 = vld [vmem:[%s5373_s1 + $0x3c0] ss:$16 sps:$4 sm:$0xff]  }
  0x15   :  { %1473 = vmatprep.subr.bf16.mxu1 %v3537_v21  ;;  %v3565_v40 = vld [vmem:[%s5373_s1 + $0x1a4] ss:$16 sps:$4 sm:$0xff]   ;;  %v3569_v42 = vld [vmem:[%s5373_s1 + $0x1a0] ss:$16 sps:$4 sm:$0xff]  }
  0x16   :  { %v3567_v41 = vld [vmem:[%s5373_s1 + $0x3a4] ss:$16 sps:$4 sm:$0xff]   ;;  %v3570_v43 = vld [vmem:[%s5373_s1 + $0x3a0] ss:$16 sps:$4 sm:$0xff]  }
  0x17   :  { %1433 = vmatpush1.bf16.msra.mxu0 %v3539_v22  ;;  %v3571_v44 = vld [vmem:[%s5373_s1 + $0x184] ss:$16 sps:$4 sm:$0xff]   ;;  %v3575_v49 = vld [vmem:[%s5373_s1 + $0x180] ss:$16 sps:$4 sm:$0xff]  }
  0x18   :  { %1474 = vmatpush1.bf16.msra.mxu1 %v3540_v23  ;;  %1434 = vmatprep.subr.bf16.mxu0 %v3541_v24  ;;  %v3573_v45 = vld [vmem:[%s5373_s1 + $0x384] ss:$16 sps:$4 sm:$0xff]   ;;  %v3576_v50 = vld [vmem:[%s5373_s1 + $0x380] ss:$16 sps:$4 sm:$0xff]  }
  0x19   :  { %1475 = vmatprep.subr.bf16.mxu1 %v3543_v25  ;;  %v27_v46 = vld [vmem:[%s5374_s0] sm:$0xff] }
  0x1a   :  { %v4254_v47 = vcombine.high %v27_v46, %v27_v46  ;;  %v3577_v52 = vld [vmem:[%s5373_s1 + $0x164] ss:$16 sps:$4 sm:$0xff]   ;;  %v3581_v54 = vld [vmem:[%s5373_s1 + $0x160] ss:$16 sps:$4 sm:$0xff]   ;;  %v4323_v6 = vcombine.low %v27_v46, %v27_v46 }
  0x1b   :  { %1435 = vmatpush1.bf16.msra.mxu0 %v3545_v26  ;;  %v3579_v53 = vld [vmem:[%s5373_s1 + $0x364] ss:$16 sps:$4 sm:$0xff]   ;;  %v3582_v55 = vld [vmem:[%s5373_s1 + $0x360] ss:$16 sps:$4 sm:$0xff]  }
  0x1c   :  { %1476 = vmatpush1.bf16.msra.mxu1 %v3546_v27  ;;  %1436 = vmatprep.subr.bf16.mxu0 %v3547_v28  ;;  %v3583_v56 = vld [vmem:[%s5373_s1 + $0x144] ss:$16 sps:$4 sm:$0xff]   ;;  %v3587_v58 = vld [vmem:[%s5373_s1 + $0x140] ss:$16 sps:$4 sm:$0xff]  }
  0x1d   :  { %1477 = vmatprep.subr.bf16.mxu1 %v3549_v29  ;;  %1454 = vmatprep.mubr.bf16.mxu0 %v4254_v47  ;;  %v3585_v57 = vld [vmem:[%s5373_s1 + $0x344] ss:$16 sps:$4 sm:$0xff]   ;;  %v3588_v59 = vld [vmem:[%s5373_s1 + $0x340] ss:$16 sps:$4 sm:$0xff]  }
  0x1e   :  { %v3589_v60 = vld [vmem:[%s5373_s1 + $0x124] ss:$16 sps:$4 sm:$0xff]   ;;  %v3593_v62 = vld [vmem:[%s5373_s1 + $0x120] ss:$16 sps:$4 sm:$0xff]  }
  0x1f   :  { %1437 = vmatpush1.bf16.msra.mxu0 %v3551_v30  ;;  %v3591_v61 = vld [vmem:[%s5373_s1 + $0x324] ss:$16 sps:$4 sm:$0xff]   ;;  %v3594_v63 = vld [vmem:[%s5373_s1 + $0x320] ss:$16 sps:$4 sm:$0xff]  }
  0x20   :  { %1478 = vmatpush1.bf16.msra.mxu1 %v3552_v31  ;;  %1438 = vmatprep.subr.bf16.mxu0 %v3553_v32  ;;  %v3595_v0 = vld [vmem:[%s5373_s1 + $0x104] ss:$16 sps:$4 sm:$0xff]   ;;  %v3599_v2 = vld [vmem:[%s5373_s1 + $0x100] ss:$16 sps:$4 sm:$0xff]  }
  0x21   :  { %1479 = vmatprep.subr.bf16.mxu1 %v3555_v33  ;;  %v3597_v1 = vld [vmem:[%s5373_s1 + $0x304] ss:$16 sps:$4 sm:$0xff]   ;;  %v3600_v3 = vld [vmem:[%s5373_s1 + $0x300] ss:$16 sps:$4 sm:$0xff]  }
  0x22   :  { %v3607_v4 = vld [vmem:[%s5373_s1 + $0x4e4] ss:$16 sps:$4 sm:$0xff]   ;;  %v3605_v8 = vld [vmem:[%s5373_s1 + $0x4e0] ss:$16 sps:$4 sm:$0xff]  }
  0x23   :  { %1439 = vmatpush2.bf16.msra.mxu0 %v3557_v34  ;;  %v3610_v5 = vld [vmem:[%s5373_s1 + $0x6e4] ss:$16 sps:$4 sm:$0xff]   ;;  %v3608_v9 = vld [vmem:[%s5373_s1 + $0x6e0] ss:$16 sps:$4 sm:$0xff]  }
  0x24   :  { %1480 = vmatpush2.bf16.msra.mxu1 %v3558_v35  ;;  %1440 = vmatprep.subr.bf16.mxu0 %v3559_v36  ;;  %v3613_v10 = vld [vmem:[%s5373_s1 + $0x4c4] ss:$16 sps:$4 sm:$0xff]   ;;  %v3611_v12 = vld [vmem:[%s5373_s1 + $0x4c0] ss:$16 sps:$4 sm:$0xff]  }
  0x25   :  { %1481 = vmatprep.subr.bf16.mxu1 %v3561_v37  ;;  %v3616_v11 = vld [vmem:[%s5373_s1 + $0x6c4] ss:$16 sps:$4 sm:$0xff]   ;;  %v3614_v13 = vld [vmem:[%s5373_s1 + $0x6c0] ss:$16 sps:$4 sm:$0xff]  }
  0x26   :  { %v3619_v14 = vld [vmem:[%s5373_s1 + $0x4a4] ss:$16 sps:$4 sm:$0xff]   ;;  %v3617_v17 = vld [vmem:[%s5373_s1 + $0x4a0] ss:$16 sps:$4 sm:$0xff]  }
  0x27   :  { %1441 = vmatpush2.bf16.msra.mxu0 %v3563_v38  ;;  %v3622_v15 = vld [vmem:[%s5373_s1 + $0x6a4] ss:$16 sps:$4 sm:$0xff]   ;;  %v3620_v18 = vld [vmem:[%s5373_s1 + $0x6a0] ss:$16 sps:$4 sm:$0xff]  }
  0x28   :  { %1482 = vmatpush2.bf16.msra.mxu1 %v3564_v39  ;;  %1442 = vmatprep.subr.bf16.mxu0 %v3565_v40  ;;  %v3625_v19 = vld [vmem:[%s5373_s1 + $0x484] ss:$16 sps:$4 sm:$0xff]   ;;  %v3623_v21 = vld [vmem:[%s5373_s1 + $0x480] ss:$16 sps:$4 sm:$0xff]  }
  0x29   :  { %1483 = vmatprep.subr.bf16.mxu1 %v3567_v41  ;;  %v3628_v20 = vld [vmem:[%s5373_s1 + $0x684] ss:$16 sps:$4 sm:$0xff]   ;;  %v3626_v22 = vld [vmem:[%s5373_s1 + $0x680] ss:$16 sps:$4 sm:$0xff]  }
  0x2a   :  { %v3631_v23 = vld [vmem:[%s5373_s1 + $0x464] ss:$16 sps:$4 sm:$0xff]   ;;  %v3629_v25 = vld [vmem:[%s5373_s1 + $0x460] ss:$16 sps:$4 sm:$0xff]  }
  0x2b   :  { %1443 = vmatpush2.bf16.msra.mxu0 %v3569_v42  ;;  %v3634_v24 = vld [vmem:[%s5373_s1 + $0x664] ss:$16 sps:$4 sm:$0xff]   ;;  %v3632_v26 = vld [vmem:[%s5373_s1 + $0x660] ss:$16 sps:$4 sm:$0xff]   ;;  %v3659_v42 = vld [vmem:[%s5373_s1 + $0xec] ss:$16 sps:$4 sm:$0xff]  }
  0x2c   :  { %1484 = vmatpush2.bf16.msra.mxu1 %v3570_v43  ;;  %1444 = vmatprep.subr.bf16.mxu0 %v3571_v44  ;;  %v3637_v27 = vld [vmem:[%s5373_s1 + $0x444] ss:$16 sps:$4 sm:$0xff]   ;;  %v3635_v29 = vld [vmem:[%s5373_s1 + $0x440] ss:$16 sps:$4 sm:$0xff]   ;;  %v4442_v44 = vld [vmem:[%s5374_s0 + $0x18] ss:$0 sps:$4 sm:$0xff]  }
  0x2d   :  { %1485 = vmatprep.subr.bf16.mxu1 %v3573_v45  ;;  %v3640_v28 = vld [vmem:[%s5373_s1 + $0x644] ss:$16 sps:$4 sm:$0xff]   ;;  %v3638_v30 = vld [vmem:[%s5373_s1 + $0x640] ss:$16 sps:$4 sm:$0xff]   ;;  %v3657_v45 = vld [vmem:[%s5373_s1 + $0xe8] ss:$16 sps:$4 sm:$0xff]  }
  0x2e   :  { %v3643_v31 = vld [vmem:[%s5373_s1 + $0x424] ss:$16 sps:$4 sm:$0xff]   ;;  %v3641_v34 = vld [vmem:[%s5373_s1 + $0x420] ss:$16 sps:$4 sm:$0xff]  }
  0x2f   :  { %1445 = vmatpush2.bf16.msra.mxu0 %v3575_v49  ;;  %v3646_v32 = vld [vmem:[%s5373_s1 + $0x624] ss:$16 sps:$4 sm:$0xff]   ;;  %v3644_v36 = vld [vmem:[%s5373_s1 + $0x620] ss:$16 sps:$4 sm:$0xff]  }
  0x30   :  { %1486 = vmatpush2.bf16.msra.mxu1 %v3576_v50  ;;  %1446 = vmatprep.subr.bf16.mxu0 %v3577_v52  ;;  %v4405_v33 = vld [vmem:[%s5374_s0 + $0x10] sm:$0xff]  ;;  %v3663_v50 = vld [vmem:[%s5373_s1 + $0xc8] ss:$16 sps:$4 sm:$0xff]  }
  0x31   :  { %1487 = vmatprep.subr.bf16.mxu1 %v3579_v53  ;;  %v4412_v35 = vcombine.high %v4405_v33, %v4405_v33  ;;  %v3649_v37 = vld [vmem:[%s5373_s1 + $0x404] ss:$16 sps:$4 sm:$0xff]   ;;  %v3647_v39 = vld [vmem:[%s5373_s1 + $0x400] ss:$16 sps:$4 sm:$0xff]   ;;  %v3671_v53 = vld [vmem:[%s5373_s1 + $0xac] ss:$16 sps:$4 sm:$0xff]  }
  0x32   :  { %v3652_v38 = vld [vmem:[%s5373_s1 + $0x604] ss:$16 sps:$4 sm:$0xff]   ;;  %v3650_v40 = vld [vmem:[%s5373_s1 + $0x600] ss:$16 sps:$4 sm:$0xff]  }
  0x33   :  { %1447 = vmatpush2.bf16.msra.mxu0 %v3581_v54  ;;  %v3655_v41 = vld [vmem:[%s5373_s1 + $0x5e4] ss:$16 sps:$4 sm:$0xff]   ;;  %v3653_v43 = vld [vmem:[%s5373_s1 + $0x5e0] ss:$16 sps:$4 sm:$0xff]  }
  0x34   :  { %1488 = vmatpush2.bf16.msra.mxu1 %v3582_v55  ;;  %1448 = vmatprep.subr.bf16.mxu0 %v3583_v56  ;;  %v3662_v46 = vld [vmem:[%s5373_s1 + $0x5c4] ss:$16 sps:$4 sm:$0xff]   ;;  %v3660_v49 = vld [vmem:[%s5373_s1 + $0x5c0] ss:$16 sps:$4 sm:$0xff]   ;;  %v3669_v55 = vld [vmem:[%s5373_s1 + $0xa8] ss:$16 sps:$4 sm:$0xff]  }
  0x35   :  { %1489 = vmatprep.subr.bf16.mxu1 %v3585_v57  ;;  %v3668_v52 = vld [vmem:[%s5373_s1 + $0x5a4] ss:$16 sps:$4 sm:$0xff]   ;;  %v3666_v54 = vld [vmem:[%s5373_s1 + $0x5a0] ss:$16 sps:$4 sm:$0xff]  }
  0x36   :  { %v3674_v56 = vld [vmem:[%s5373_s1 + $0x584] ss:$16 sps:$4 sm:$0xff]   ;;  %v3672_v57 = vld [vmem:[%s5373_s1 + $0x580] ss:$16 sps:$4 sm:$0xff]  }
  0x37   :  { %1449 = vmatpush2.bf16.msra.mxu0 %v3587_v58  ;;  %v3675_v58 = vld [vmem:[%s5373_s1 + $0x88] ss:$16 sps:$4 sm:$0xff]  }
  0x38   :  { %1490 = vmatpush2.bf16.msra.mxu1 %v3588_v59  ;;  %1450 = vmatprep.subr.bf16.mxu0 %v3589_v60  ;;  %v3680_v59 = vld [vmem:[%s5373_s1 + $0x564] ss:$16 sps:$4 sm:$0xff]   ;;  %v3683_v60 = vld [vmem:[%s5373_s1 + $0x6c] ss:$16 sps:$4 sm:$0xff]  }
  0x39   :  { %1491 = vmatprep.subr.bf16.mxu1 %v3591_v61  ;;  %v3678_v61 = vld [vmem:[%s5373_s1 + $0x560] ss:$16 sps:$4 sm:$0xff]  }
  0x3b   :  { %1451 = vmatpush2.bf16.msra.mxu0 %v3593_v62  ;;  %v3681_v62 = vld [vmem:[%s5373_s1 + $0x68] ss:$16 sps:$4 sm:$0xff]  }
  0x3c   :  { %1492 = vmatpush2.bf16.msra.mxu1 %v3594_v63  ;;  %1452 = vmatprep.subr.bf16.mxu0 %v3595_v0  ;;  %v3686_v63 = vld [vmem:[%s5373_s1 + $0x544] ss:$16 sps:$4 sm:$0xff]   ;;  %v3689_v0 = vld [vmem:[%s5373_s1 + $0x4c] ss:$16 sps:$4 sm:$0xff]  }
  0x3d   :  { %1493 = vmatprep.subr.bf16.mxu1 %v3597_v1  ;;  %v3684_v1 = vld [vmem:[%s5373_s1 + $0x540] ss:$16 sps:$4 sm:$0xff]  }
  0x3f   :  { %1453 = vmatpush2.bf16.msra.mxu0 %v3599_v2  ;;  %v3687_v2 = vld [vmem:[%s5373_s1 + $0x48] ss:$16 sps:$4 sm:$0xff]  }
  0x40   :  { %1494 = vmatpush2.bf16.msra.mxu1 %v3600_v3  ;;  %1504 = vmatprep.subr.bf16.mxu0 %v3607_v4  ;;  %v3692_v3 = vld [vmem:[%s5373_s1 + $0x524] ss:$16 sps:$4 sm:$0xff]   ;;  %v3695_v4 = vld [vmem:[%s5373_s1 + $0x2c] ss:$16 sps:$4 sm:$0xff]  }
  0x41   :  { %1545 = vmatprep.subr.bf16.mxu1 %v3610_v5  ;;  %v3690_v5 = vld [vmem:[%s5373_s1 + $0x520] ss:$16 sps:$4 sm:$0xff]  }
  0x42   :  { %1455 = vmatmul.mubr.bf16.vlgmr.msra.gmra.mxu0 %v4323_v6 }
  0x43   :  { %1496 = vmatmul.mubr.bf16.vlgmr.msra.gmra.mxu1 %v4325_v7  ;;  %1505 = vmatpush1.bf16.msra.mxu0 %v3605_v8  ;;  %v3693_v8 = vld [vmem:[%s5373_s1 + $0x28] ss:$16 sps:$4 sm:$0xff]  }
  0x44   :  { %1546 = vmatpush1.bf16.msra.mxu1 %v3608_v9  ;;  %1506 = vmatprep.subr.bf16.mxu0 %v3613_v10  ;;  %v3698_v9 = vld [vmem:[%s5373_s1 + $0x504] ss:$16 sps:$4 sm:$0xff]   ;;  %v3701_v10 = vld [vmem:[%s5373_s1 + $0xc] ss:$16 sps:$4 sm:$0xff]  }
  0x45   :  { %1547 = vmatprep.subr.bf16.mxu1 %v3616_v11  ;;  %1577 = vmatprep.mubr.bf16.mxu1 %v4072_v16  ;;  %v3696_v11 = vld [vmem:[%s5373_s1 + $0x500] ss:$16 sps:$4 sm:$0xff]  }
  0x46   :  { %1536 = vmatprep.mubr.bf16.mxu0 %v4412_v35 }
  0x47   :  { %1507 = vmatpush1.bf16.msra.mxu0 %v3611_v12  ;;  %v3699_v12 = vld [vmem:[%s5373_s1 + $0x8] ss:$16 sps:$4 sm:$0xff]  }
  0x48   :  { %1548 = vmatpush1.bf16.msra.mxu1 %v3614_v13  ;;  %1508 = vmatprep.subr.bf16.mxu0 %v3619_v14  ;;  %v3706_v13 = vld [vmem:[%s5373_s1 + $0x1ec] ss:$16 sps:$4 sm:$0xff]  }
  0x49   :  { %1549 = vmatprep.subr.bf16.mxu1 %v3622_v15  ;;  %v3709_v14 = vld [vmem:[%s5373_s1 + $0x2ec] ss:$16 sps:$4 sm:$0xff]   ;;  %v4541_v15 = vcombine.low %v4405_v33, %v4405_v33  ;;  %v3731_v33 = vld [vmem:[%s5373_s1 + $0x268] ss:$16 sps:$4 sm:$0xff]  }
  0x4b   :  { %1509 = vmatpush1.bf16.msra.mxu0 %v3617_v17  ;;  %v3704_v17 = vld [vmem:[%s5373_s1 + $0x1e8] ss:$16 sps:$4 sm:$0xff]  }
  0x4c   :  { %1550 = vmatpush1.bf16.msra.mxu1 %v3620_v18  ;;  %1510 = vmatprep.subr.bf16.mxu0 %v3625_v19  ;;  %v3707_v18 = vld [vmem:[%s5373_s1 + $0x2e8] ss:$16 sps:$4 sm:$0xff]   ;;  %v3712_v19 = vld [vmem:[%s5373_s1 + $0x1cc] ss:$16 sps:$4 sm:$0xff]  }
  0x4d   :  { %1551 = vmatprep.subr.bf16.mxu1 %v3628_v20  ;;  %v3715_v20 = vld [vmem:[%s5373_s1 + $0x2cc] ss:$16 sps:$4 sm:$0xff]  }
  0x4f   :  { %1511 = vmatpush1.bf16.msra.mxu0 %v3623_v21  ;;  %v3710_v21 = vld [vmem:[%s5373_s1 + $0x1c8] ss:$16 sps:$4 sm:$0xff]  }
  0x50   :  { %1552 = vmatpush1.bf16.msra.mxu1 %v3626_v22  ;;  %1512 = vmatprep.subr.bf16.mxu0 %v3631_v23  ;;  %v3713_v22 = vld [vmem:[%s5373_s1 + $0x2c8] ss:$16 sps:$4 sm:$0xff]   ;;  %v3718_v23 = vld [vmem:[%s5373_s1 + $0x1ac] ss:$16 sps:$4 sm:$0xff]  }
  0x51   :  { %1553 = vmatprep.subr.bf16.mxu1 %v3634_v24  ;;  %v3721_v24 = vld [vmem:[%s5373_s1 + $0x2ac] ss:$16 sps:$4 sm:$0xff]  }
  0x53   :  { %1513 = vmatpush1.bf16.msra.mxu0 %v3629_v25  ;;  %v3716_v25 = vld [vmem:[%s5373_s1 + $0x1a8] ss:$16 sps:$4 sm:$0xff]  }
  0x54   :  { %1554 = vmatpush1.bf16.msra.mxu1 %v3632_v26  ;;  %1514 = vmatprep.subr.bf16.mxu0 %v3637_v27  ;;  %v3719_v26 = vld [vmem:[%s5373_s1 + $0x2a8] ss:$16 sps:$4 sm:$0xff]   ;;  %v3724_v27 = vld [vmem:[%s5373_s1 + $0x18c] ss:$16 sps:$4 sm:$0xff]  }
  0x55   :  { %1555 = vmatprep.subr.bf16.mxu1 %v3640_v28  ;;  %v3722_v28 = vld [vmem:[%s5373_s1 + $0x188] ss:$16 sps:$4 sm:$0xff]  }
  0x57   :  { %1515 = vmatpush1.bf16.msra.mxu0 %v3635_v29  ;;  %v3725_v29 = vld [vmem:[%s5373_s1 + $0x288] ss:$16 sps:$4 sm:$0xff]  }
  0x58   :  { %1556 = vmatpush1.bf16.msra.mxu1 %v3638_v30  ;;  %1516 = vmatprep.subr.bf16.mxu0 %v3643_v31  ;;  %v3730_v30 = vld [vmem:[%s5373_s1 + $0x16c] ss:$16 sps:$4 sm:$0xff]  }
  0x59   :  { %1557 = vmatprep.subr.bf16.mxu1 %v3646_v32  ;;  %v3733_v31 = vld [vmem:[%s5373_s1 + $0x26c] ss:$16 sps:$4 sm:$0xff]   ;;  %v3728_v32 = vld [vmem:[%s5373_s1 + $0x168] ss:$16 sps:$4 sm:$0xff]  }
  0x5b   :  { %1517 = vmatpush1.bf16.msra.mxu0 %v3641_v34  ;;  %v3736_v34 = vld [vmem:[%s5373_s1 + $0x14c] ss:$16 sps:$4 sm:$0xff]  }
  0x5c   :  { %1558 = vmatpush1.bf16.msra.mxu1 %v3644_v36  ;;  %1518 = vmatprep.subr.bf16.mxu0 %v3649_v37  ;;  %v3739_v36 = vld [vmem:[%s5373_s1 + $0x24c] ss:$16 sps:$4 sm:$0xff]   ;;  %v3734_v37 = vld [vmem:[%s5373_s1 + $0x148] ss:$16 sps:$4 sm:$0xff]  }
  0x5d   :  { %1559 = vmatprep.subr.bf16.mxu1 %v3652_v38  ;;  %v3737_v38 = vld [vmem:[%s5373_s1 + $0x248] ss:$16 sps:$4 sm:$0xff]  }
  0x5f   :  { %1519 = vmatpush1.bf16.msra.mxu0 %v3647_v39  ;;  %v3742_v39 = vld [vmem:[%s5373_s1 + $0x12c] ss:$16 sps:$4 sm:$0xff]  }
  0x60   :  { %1560 = vmatpush1.bf16.msra.mxu1 %v3650_v40  ;;  %1520 = vmatprep.subr.bf16.mxu0 %v3655_v41  ;;  %v3745_v40 = vld [vmem:[%s5373_s1 + $0x22c] ss:$16 sps:$4 sm:$0xff]   ;;  %v3740_v41 = vld [vmem:[%s5373_s1 + $0x128] ss:$16 sps:$4 sm:$0xff]  }
  0x61   :  { %1586 = vmatprep.subr.bf16.mxu1 %v3659_v42  ;;  %v3743_v42 = vld [vmem:[%s5373_s1 + $0x228] ss:$16 sps:$4 sm:$0xff]  }
  0x63   :  { %1578 = vmatmul.mubr.bf16.vlgmr.msra.gmra.mxu1 %v4442_v44  ;;  %1521 = vmatpush2.bf16.msra.mxu0 %v3653_v43  ;;  %v3748_v43 = vld [vmem:[%s5373_s1 + $0x10c] ss:$16 sps:$4 sm:$0xff]  }
  0x64   :  { %1587 = vmatpush1.bf16.msra.mxu1 %v3657_v45  ;;  %1522 = vmatprep.subr.bf16.mxu0 %v3662_v46  ;;  %v3751_v45 = vld [vmem:[%s5373_s1 + $0x20c] ss:$16 sps:$4 sm:$0xff]   ;;  %v3746_v46 = vld [vmem:[%s5373_s1 + $0x108] ss:$16 sps:$4 sm:$0xff]  }
  0x65   :  { %1588 = vmatprep.subr.bf16.mxu1 %v3665_v48  ;;  %1618 = vmatprep.mubr.bf16.mxu1 %v4254_v47  ;;  %v3677_v47 = vld [vmem:[%s5373_s1 + $0x8c] ss:$16 sps:$4 sm:$0xff]   ;;  %v3749_v48 = vld [vmem:[%s5373_s1 + $0x208] ss:$16 sps:$4 sm:$0xff]  }
  0x67   :  { %1523 = vmatpush2.bf16.msra.mxu0 %v3660_v49  ;;  %v3754_v49 = vld [vmem:[%s5373_s1 + $0x3ec] ss:$16 sps:$4 sm:$0xff]  }
  0x68   :  { %1589 = vmatpush1.bf16.msra.mxu1 %v3663_v50  ;;  %1524 = vmatprep.subr.bf16.mxu0 %v3668_v52  ;;  %v3757_v50 = vld [vmem:[%s5373_s1 + $0x4ec] ss:$16 sps:$4 sm:$0xff]   ;;  %v3752_v52 = vld [vmem:[%s5373_s1 + $0x3e8] ss:$16 sps:$4 sm:$0xff]  }
  0x69   :  { %1590 = vmatprep.subr.bf16.mxu1 %v3671_v53  ;;  %v3755_v53 = vld [vmem:[%s5373_s1 + $0x4e8] ss:$16 sps:$4 sm:$0xff]  }
  0x6b   :  { %1525 = vmatpush2.bf16.msra.mxu0 %v3666_v54  ;;  %v3760_v54 = vld [vmem:[%s5373_s1 + $0x3cc] ss:$16 sps:$4 sm:$0xff]  }
  0x6c   :  { %1591 = vmatpush1.bf16.msra.mxu1 %v3669_v55  ;;  %1526 = vmatprep.subr.bf16.mxu0 %v3674_v56  ;;  %v3763_v55 = vld [vmem:[%s5373_s1 + $0x4cc] ss:$16 sps:$4 sm:$0xff]   ;;  %v3758_v56 = vld [vmem:[%s5373_s1 + $0x3c8] ss:$16 sps:$4 sm:$0xff]  }
  0x6d   :  { %1592 = vmatprep.subr.bf16.mxu1 %v3677_v47  ;;  %v3761_v47 = vld [vmem:[%s5373_s1 + $0x4c8] ss:$16 sps:$4 sm:$0xff]  }
  0x6f   :  { %1527 = vmatpush2.bf16.msra.mxu0 %v3672_v57  ;;  %v3766_v57 = vld [vmem:[%s5373_s1 + $0x3ac] ss:$16 sps:$4 sm:$0xff]  }
  0x70   :  { %1593 = vmatpush1.bf16.msra.mxu1 %v3675_v58  ;;  %1528 = vmatprep.subr.bf16.mxu0 %v3680_v59  ;;  %v3769_v58 = vld [vmem:[%s5373_s1 + $0x4ac] ss:$16 sps:$4 sm:$0xff]   ;;  %v3764_v59 = vld [vmem:[%s5373_s1 + $0x3a8] ss:$16 sps:$4 sm:$0xff]  }
  0x71   :  { %1594 = vmatprep.subr.bf16.mxu1 %v3683_v60  ;;  %v3772_v60 = vld [vmem:[%s5373_s1 + $0x38c] ss:$16 sps:$4 sm:$0xff]  }
  0x73   :  { %1529 = vmatpush2.bf16.msra.mxu0 %v3678_v61  ;;  %v3775_v61 = vld [vmem:[%s5373_s1 + $0x48c] ss:$16 sps:$4 sm:$0xff]  }
  0x74   :  { %1595 = vmatpush1.bf16.msra.mxu1 %v3681_v62  ;;  %1530 = vmatprep.subr.bf16.mxu0 %v3686_v63  ;;  %v3773_v62 = vld [vmem:[%s5373_s1 + $0x488] ss:$16 sps:$4 sm:$0xff]   ;;  %v3778_v63 = vld [vmem:[%s5373_s1 + $0x36c] ss:$16 sps:$4 sm:$0xff]  }
  0x75   :  { %1596 = vmatprep.subr.bf16.mxu1 %v3689_v0  ;;  %v3781_v0 = vld [vmem:[%s5373_s1 + $0x46c] ss:$16 sps:$4 sm:$0xff]  }
  0x77   :  { %1531 = vmatpush2.bf16.msra.mxu0 %v3684_v1  ;;  %v3776_v1 = vld [vmem:[%s5373_s1 + $0x368] ss:$16 sps:$4 sm:$0xff]  }
  0x78   :  { %1597 = vmatpush1.bf16.msra.mxu1 %v3687_v2  ;;  %1532 = vmatprep.subr.bf16.mxu0 %v3692_v3  ;;  %v3779_v2 = vld [vmem:[%s5373_s1 + $0x468] ss:$16 sps:$4 sm:$0xff]   ;;  %v3784_v3 = vld [vmem:[%s5373_s1 + $0x34c] ss:$16 sps:$4 sm:$0xff]  }
  0x79   :  { %1598 = vmatprep.subr.bf16.mxu1 %v3695_v4  ;;  %v3787_v4 = vld [vmem:[%s5373_s1 + $0x44c] ss:$16 sps:$4 sm:$0xff]  }
  0x7b   :  { %1533 = vmatpush2.bf16.msra.mxu0 %v3690_v5  ;;  %v3782_v5 = vld [vmem:[%s5373_s1 + $0x348] ss:$16 sps:$4 sm:$0xff]  }
  0x7c   :  { %1599 = vmatpush1.bf16.msra.mxu1 %v3693_v8  ;;  %1534 = vmatprep.subr.bf16.mxu0 %v3698_v9  ;;  %v3785_v8 = vld [vmem:[%s5373_s1 + $0x448] ss:$16 sps:$4 sm:$0xff]   ;;  %v3790_v9 = vld [vmem:[%s5373_s1 + $0x32c] ss:$16 sps:$4 sm:$0xff]  }
  0x7d   :  { %1600 = vmatprep.subr.bf16.mxu1 %v3701_v10  ;;  %v3793_v10 = vld [vmem:[%s5373_s1 + $0x42c] ss:$16 sps:$4 sm:$0xff]  }
  0x7f   :  { %1535 = vmatpush2.bf16.msra.mxu0 %v3696_v11  ;;  %v3788_v11 = vld [vmem:[%s5373_s1 + $0x328] ss:$16 sps:$4 sm:$0xff]  }
  0x80   :  { %1601 = vmatpush1.bf16.msra.mxu1 %v3699_v12  ;;  %1627 = vmatprep.subr.bf16.mxu0 %v3709_v14  ;;  %v3791_v12 = vld [vmem:[%s5373_s1 + $0x428] ss:$16 sps:$4 sm:$0xff]   ;;  %v3799_v14 = vld [vmem:[%s5373_s1 + $0x40c] ss:$16 sps:$4 sm:$0xff]  }
  0x81   :  { %1602 = vmatprep.subr.bf16.mxu1 %v3706_v13  ;;  %v3796_v13 = vld [vmem:[%s5373_s1 + $0x30c] ss:$16 sps:$4 sm:$0xff]  }
  0x82   :  { %1537 = vmatmul.mubr.bf16.vlgmr.msra.gmra.mxu0 %v4541_v15 }
  0x83   :  { %1628 = vmatpush1.bf16.msra.mxu0 %v3707_v18  ;;  %1659 = vmatprep.mubr.bf16.mxu0 %v4265_v51  ;;  %v3727_v51 = vld [vmem:[%s5373_s1 + $0x28c] ss:$16 sps:$4 sm:$0xff]   ;;  %v3797_v18 = vld [vmem:[%s5373_s1 + $0x408] ss:$16 sps:$4 sm:$0xff]  }
  0x84   :  { %1603 = vmatpush2.bf16.msra.mxu1 %v3704_v17  ;;  %1629 = vmatprep.subr.bf16.mxu0 %v3715_v20  ;;  %v3794_v17 = vld [vmem:[%s5373_s1 + $0x308] ss:$16 sps:$4 sm:$0xff]   ;;  %v3805_v20 = vld [vmem:[%s5373_s1 + $0x6ec] ss:$16 sps:$4 sm:$0xff]  }
  0x85   :  { %1604 = vmatprep.subr.bf16.mxu1 %v3712_v19  ;;  %v3802_v19 = vld [vmem:[%s5373_s1 + $0x5ec] ss:$16 sps:$4 sm:$0xff]  }
  0x87   :  { %1630 = vmatpush1.bf16.msra.mxu0 %v3713_v22  ;;  %v3803_v22 = vld [vmem:[%s5373_s1 + $0x6e8] ss:$16 sps:$4 sm:$0xff]  }
  0x88   :  { %1605 = vmatpush2.bf16.msra.mxu1 %v3710_v21  ;;  %1631 = vmatprep.subr.bf16.mxu0 %v3721_v24  ;;  %v3800_v21 = vld [vmem:[%s5373_s1 + $0x5e8] ss:$16 sps:$4 sm:$0xff]   ;;  %v3811_v24 = vld [vmem:[%s5373_s1 + $0x6cc] ss:$16 sps:$4 sm:$0xff]  }
  0x89   :  { %1606 = vmatprep.subr.bf16.mxu1 %v3718_v23  ;;  %v3808_v23 = vld [vmem:[%s5373_s1 + $0x5cc] ss:$16 sps:$4 sm:$0xff]  }
  0x8b   :  { %1632 = vmatpush1.bf16.msra.mxu0 %v3719_v26  ;;  %v3809_v26 = vld [vmem:[%s5373_s1 + $0x6c8] ss:$16 sps:$4 sm:$0xff]  }
  0x8c   :  { %1607 = vmatpush2.bf16.msra.mxu1 %v3716_v25  ;;  %1633 = vmatprep.subr.bf16.mxu0 %v3727_v51  ;;  %v3806_v25 = vld [vmem:[%s5373_s1 + $0x5c8] ss:$16 sps:$4 sm:$0xff]   ;;  %v3817_v51 = vld [vmem:[%s5373_s1 + $0x6ac] ss:$16 sps:$4 sm:$0xff]  }
  0x8d   :  { %1608 = vmatprep.subr.bf16.mxu1 %v3724_v27  ;;  %v3814_v27 = vld [vmem:[%s5373_s1 + $0x5ac] ss:$16 sps:$4 sm:$0xff]  }
  0x8f   :  { %1634 = vmatpush1.bf16.msra.mxu0 %v3725_v29  ;;  %v3820_v29 = vld [vmem:[%s5373_s1 + $0x58c] ss:$16 sps:$4 sm:$0xff]  }
  0x90   :  { %1609 = vmatpush2.bf16.msra.mxu1 %v3722_v28  ;;  %1635 = vmatprep.subr.bf16.mxu0 %v3733_v31  ;;  %v3812_v28 = vld [vmem:[%s5373_s1 + $0x5a8] ss:$16 sps:$4 sm:$0xff]  }
  0x91   :  { %1610 = vmatprep.subr.bf16.mxu1 %v3730_v30  ;;  %v3823_v30 = vld [vmem:[%s5373_s1 + $0x68c] ss:$16 sps:$4 sm:$0xff]   ;;  %v3818_v31 = vld [vmem:[%s5373_s1 + $0x588] ss:$16 sps:$4 sm:$0xff]  }
  0x93   :  { %1636 = vmatpush1.bf16.msra.mxu0 %v3731_v33  ;;  %v3829_v33 = vld [vmem:[%s5373_s1 + $0x66c] ss:$16 sps:$4 sm:$0xff]  }
  0x94   :  { %1611 = vmatpush2.bf16.msra.mxu1 %v3728_v32  ;;  %1637 = vmatprep.subr.bf16.mxu0 %v3739_v36  ;;  %v3826_v32 = vld [vmem:[%s5373_s1 + $0x56c] ss:$16 sps:$4 sm:$0xff]   ;;  %v3827_v36 = vld [vmem:[%s5373_s1 + $0x668] ss:$16 sps:$4 sm:$0xff]  }
  0x95   :  { %1612 = vmatprep.subr.bf16.mxu1 %v3736_v34  ;;  %v3824_v34 = vld [vmem:[%s5373_s1 + $0x568] ss:$16 sps:$4 sm:$0xff]  }
  0x97   :  { %1638 = vmatpush1.bf16.msra.mxu0 %v3737_v38  ;;  %v3835_v38 = vld [vmem:[%s5373_s1 + $0x64c] ss:$16 sps:$4 sm:$0xff]  }
  0x98   :  { %1613 = vmatpush2.bf16.msra.mxu1 %v3734_v37  ;;  %1639 = vmatprep.subr.bf16.mxu0 %v3745_v40  ;;  %v3832_v37 = vld [vmem:[%s5373_s1 + $0x54c] ss:$16 sps:$4 sm:$0xff]   ;;  %v3833_v40 = vld [vmem:[%s5373_s1 + $0x648] ss:$16 sps:$4 sm:$0xff]  }
  0x99   :  { %1614 = vmatprep.subr.bf16.mxu1 %v3742_v39  ;;  %v3830_v39 = vld [vmem:[%s5373_s1 + $0x548] ss:$16 sps:$4 sm:$0xff]  }
  0x9b   :  { %1640 = vmatpush1.bf16.msra.mxu0 %v3743_v42  ;;  %v3841_v42 = vld [vmem:[%s5373_s1 + $0x62c] ss:$16 sps:$4 sm:$0xff]  }
  0x9c   :  { %1615 = vmatpush2.bf16.msra.mxu1 %v3740_v41  ;;  %1641 = vmatprep.subr.bf16.mxu0 %v3751_v45  ;;  %v3838_v41 = vld [vmem:[%s5373_s1 + $0x52c] ss:$16 sps:$4 sm:$0xff]   ;;  %v3839_v45 = vld [vmem:[%s5373_s1 + $0x628] ss:$16 sps:$4 sm:$0xff]  }
  0x9d   :  { %1616 = vmatprep.subr.bf16.mxu1 %v3748_v43  ;;  %v3836_v43 = vld [vmem:[%s5373_s1 + $0x528] ss:$16 sps:$4 sm:$0xff]  }
  0x9f   :  { %1642 = vmatpush1.bf16.msra.mxu0 %v3749_v48  ;;  %v3847_v48 = vld [vmem:[%s5373_s1 + $0x60c] ss:$16 sps:$4 sm:$0xff]  }
  0xa0   :  { %1617 = vmatpush2.bf16.msra.mxu1 %v3746_v46  ;;  %1643 = vmatprep.subr.bf16.mxu0 %v3754_v49  ;;  %v3844_v46 = vld [vmem:[%s5373_s1 + $0x50c] ss:$16 sps:$4 sm:$0xff]   ;;  %v3842_v49 = vld [vmem:[%s5373_s1 + $0x508] ss:$16 sps:$4 sm:$0xff]  }
  0xa1   :  { %1668 = vmatprep.subr.bf16.mxu1 %v3757_v50  ;;  %v3845_v50 = vld [vmem:[%s5373_s1 + $0x608] ss:$16 sps:$4 sm:$0xff]  }
  0xa3   :  { %1619 = vmatmul.mubr.bf16.vlgmr.msra.gmra.mxu1 %v4323_v6  ;;  %1644 = vmatpush2.bf16.msra.mxu0 %v3752_v52  ;;  %v3767_v6 = vld [vmem:[%s5373_s1 + $0x4a8] ss:$16 sps:$4 sm:$0xff]   ;;  %v3850_v52 = vld [vmem:[%s5375_s3 + $0xe4] ss:$16 sps:$4 sm:$0xff]  }
  0xa4   :  { %1669 = vmatpush1.bf16.msra.mxu1 %v3755_v53  ;;  %1645 = vmatprep.subr.bf16.mxu0 %v3760_v54  ;;  %v3848_v53 = vld [vmem:[%s5375_s3 + $0xe0] ss:$16 sps:$4 sm:$0xff]   ;;  %v3853_v54 = vld [vmem:[%s5375_s3 + $0xc4] ss:$16 sps:$4 sm:$0xff]  }
  0xa5   :  { %1670 = vmatprep.subr.bf16.mxu1 %v3763_v55  ;;  %1700 = vmatprep.mubr.bf16.mxu1 %v4412_v35  ;;  %v3770_v35 = vld [vmem:[%s5373_s1 + $0x388] ss:$16 sps:$4 sm:$0xff]   ;;  %v3851_v55 = vld [vmem:[%s5375_s3 + $0xc0] ss:$16 sps:$4 sm:$0xff]  }
  0xa7   :  { %1646 = vmatpush2.bf16.msra.mxu0 %v3758_v56  ;;  %v3856_v56 = vld [vmem:[%s5375_s3 + $0xa4] ss:$16 sps:$4 sm:$0xff]  }
  0xa8   :  { %1671 = vmatpush1.bf16.msra.mxu1 %v3761_v47  ;;  %1647 = vmatprep.subr.bf16.mxu0 %v3766_v57  ;;  %v3854_v47 = vld [vmem:[%s5375_s3 + $0xa0] ss:$16 sps:$4 sm:$0xff]  }
  0xa9   :  { %1672 = vmatprep.subr.bf16.mxu1 %v3769_v58  ;;  %v3920_v57 = vld [vmem:[%s5375_s3 + $0x2e0] ss:$16 sps:$4 sm:$0xff]   ;;  %v3922_v58 = vld [vmem:[%s5375_s3 + $0x2e4] ss:$16 sps:$4 sm:$0xff]  }
  0xab   :  { %1648 = vmatpush2.bf16.msra.mxu0 %v3764_v59  ;;  %v3862_v59 = vld [vmem:[%s5375_s3 + $0x64] ss:$16 sps:$4 sm:$0xff]  }
  0xac   :  { %1673 = vmatpush1.bf16.msra.mxu1 %v3767_v6  ;;  %1649 = vmatprep.subr.bf16.mxu0 %v3772_v60  ;;  %v3860_v6 = vld [vmem:[%s5375_s3 + $0x60] ss:$16 sps:$4 sm:$0xff]  }
  0xad   :  { %1674 = vmatprep.subr.bf16.mxu1 %v3775_v61  ;;  %v3926_v60 = vld [vmem:[%s5375_s3 + $0x2c0] ss:$16 sps:$4 sm:$0xff]   ;;  %v3928_v61 = vld [vmem:[%s5375_s3 + $0x2c4] ss:$16 sps:$4 sm:$0xff]  }
  0xaf   :  { %1650 = vmatpush2.bf16.msra.mxu0 %v3770_v35  ;;  %v3865_v35 = vld [vmem:[%s5375_s3 + $0x44] ss:$16 sps:$4 sm:$0xff]  }
  0xb0   :  { %1675 = vmatpush1.bf16.msra.mxu1 %v3773_v62  ;;  %1651 = vmatprep.subr.bf16.mxu0 %v3778_v63  ;;  %v3863_v62 = vld [vmem:[%s5375_s3 + $0x40] ss:$16 sps:$4 sm:$0xff]  }
  0xb1   :  { %1676 = vmatprep.subr.bf16.mxu1 %v3781_v0  ;;  %v3932_v63 = vld [vmem:[%s5375_s3 + $0x2a0] ss:$16 sps:$4 sm:$0xff]   ;;  %v3934_v0 = vld [vmem:[%s5375_s3 + $0x2a4] ss:$16 sps:$4 sm:$0xff]  }
  0xb3   :  { %1652 = vmatpush2.bf16.msra.mxu0 %v3776_v1  ;;  %v3868_v1 = vld [vmem:[%s5375_s3 + $0x24] ss:$16 sps:$4 sm:$0xff]  }
  0xb4   :  { %1677 = vmatpush1.bf16.msra.mxu1 %v3779_v2  ;;  %1653 = vmatprep.subr.bf16.mxu0 %v3784_v3  ;;  %v3866_v2 = vld [vmem:[%s5375_s3 + $0x20] ss:$16 sps:$4 sm:$0xff]  }
  0xb5   :  { %1678 = vmatprep.subr.bf16.mxu1 %v3787_v4  ;;  %v3938_v3 = vld [vmem:[%s5375_s3 + $0x280] ss:$16 sps:$4 sm:$0xff]   ;;  %v3940_v4 = vld [vmem:[%s5375_s3 + $0x284] ss:$16 sps:$4 sm:$0xff]  }
  0xb7   :  { %1654 = vmatpush2.bf16.msra.mxu0 %v3782_v5  ;;  %v3871_v5 = vld [vmem:[%s5375_s3 + $0x4] ss:$16 sps:$4 sm:$0xff]  }
  0xb8   :  { %1679 = vmatpush1.bf16.msra.mxu1 %v3785_v8  ;;  %1655 = vmatprep.subr.bf16.mxu0 %v3790_v9  ;;  %v3869_v8 = vld [vmem:[%s5375_s3] ss:$16 sps:$4 sm:$0xff]  }
  0xb9   :  { %1680 = vmatprep.subr.bf16.mxu1 %v3793_v10  ;;  %v3944_v9 = vld [vmem:[%s5375_s3 + $0x260] ss:$16 sps:$4 sm:$0xff]   ;;  %v3946_v10 = vld [vmem:[%s5375_s3 + $0x264] ss:$16 sps:$4 sm:$0xff]  }
  0xbb   :  { %1656 = vmatpush2.bf16.msra.mxu0 %v3788_v11  ;;  %v3874_v11 = vld [vmem:[%s5375_s3 + $0x1e4] ss:$16 sps:$4 sm:$0xff]  }
  0xbc   :  { %1681 = vmatpush1.bf16.msra.mxu1 %v3791_v12  ;;  %1657 = vmatprep.subr.bf16.mxu0 %v3796_v13  ;;  %v3872_v12 = vld [vmem:[%s5375_s3 + $0x1e0] ss:$16 sps:$4 sm:$0xff]  }
  0xbd   :  { %1682 = vmatprep.subr.bf16.mxu1 %v3799_v14  ;;  %v3950_v13 = vld [vmem:[%s5375_s3 + $0x240] ss:$16 sps:$4 sm:$0xff]   ;;  %v3952_v14 = vld [vmem:[%s5375_s3 + $0x244] ss:$16 sps:$4 sm:$0xff]  }
  0xbf   :  { %1658 = vmatpush2.bf16.msra.mxu0 %v3794_v17  ;;  %v3877_v17 = vld [vmem:[%s5375_s3 + $0x1c4] ss:$16 sps:$4 sm:$0xff]  }
  0xc0   :  { %1683 = vmatpush1.bf16.msra.mxu1 %v3797_v18  ;;  %1709 = vmatprep.subr.bf16.mxu0 %v3805_v20  ;;  %v3875_v20 = vld [vmem:[%s5375_s3 + $0x1c0] ss:$16 sps:$4 sm:$0xff]  }
  0xc1   :  { %1684 = vmatprep.subr.bf16.mxu1 %v3802_v19 }
  0xc2   :  { %1660 = vmatmul.mubr.bf16.vlgmr.msra.gmra.mxu0 %v4325_v7  ;;  %v3815_v7 = vld [vmem:[%s5373_s1 + $0x6a8] ss:$16 sps:$4 sm:$0xff]  }
  0xc3   :  { %1710 = vmatpush1.bf16.msra.mxu0 %v3803_v22  ;;  %1741 = vmatprep.mubr.bf16.mxu0 %v4072_v16  ;;  %v3821_v16 = vld [vmem:[%s5373_s1 + $0x688] ss:$16 sps:$4 sm:$0xff]  }
  0xc4   :  { %1685 = vmatpush2.bf16.msra.mxu1 %v3800_v21  ;;  %1711 = vmatprep.subr.bf16.mxu0 %v3811_v24  ;;  %v3958_v24 = vld [vmem:[%s5375_s3 + $0x224] ss:$16 sps:$4 sm:$0xff]  }
  0xc5   :  { %1686 = vmatprep.subr.bf16.mxu1 %v3808_v23  ;;  %v3880_v23 = vld [vmem:[%s5375_s3 + $0x1a4] ss:$16 sps:$4 sm:$0xff]  }
  0xc7   :  { %1712 = vmatpush1.bf16.msra.mxu0 %v3809_v26 }
  0xc8   :  { %1687 = vmatpush2.bf16.msra.mxu1 %v3806_v25  ;;  %1713 = vmatprep.subr.bf16.mxu0 %v3817_v51  ;;  %v3956_v25 = vld [vmem:[%s5375_s3 + $0x220] ss:$16 sps:$4 sm:$0xff]  }
  0xc9   :  { %1688 = vmatprep.subr.bf16.mxu1 %v3814_v27  ;;  %v3878_v51 = vld [vmem:[%s5375_s3 + $0x1a0] ss:$16 sps:$4 sm:$0xff]  }
  0xcb   :  { %1714 = vmatpush1.bf16.msra.mxu0 %v3815_v7 }
  0xcc   :  { %1689 = vmatpush2.bf16.msra.mxu1 %v3812_v28  ;;  %1715 = vmatprep.subr.bf16.mxu0 %v3823_v30  ;;  %v3962_v30 = vld [vmem:[%s5375_s3 + $0x200] ss:$16 sps:$4 sm:$0xff]  }
  0xcd   :  { %1690 = vmatprep.subr.bf16.mxu1 %v3820_v29  ;;  %v3883_v29 = vld [vmem:[%s5375_s3 + $0x184] ss:$16 sps:$4 sm:$0xff]  }
  0xcf   :  { %1716 = vmatpush1.bf16.msra.mxu0 %v3821_v16  ;;  %v3881_v16 = vld [vmem:[%s5375_s3 + $0x180] ss:$16 sps:$4 sm:$0xff]  }
  0xd0   :  { %1691 = vmatpush2.bf16.msra.mxu1 %v3818_v31  ;;  %1717 = vmatprep.subr.bf16.mxu0 %v3829_v33  ;;  %v3964_v31 = vld [vmem:[%s5375_s3 + $0x204] ss:$16 sps:$4 sm:$0xff]  }
  0xd1   :  { %1692 = vmatprep.subr.bf16.mxu1 %v3826_v32  ;;  %v3968_v32 = vld [vmem:[%s5375_s3 + $0x3e0] ss:$16 sps:$4 sm:$0xff]   ;;  %v3970_v33 = vld [vmem:[%s5375_s3 + $0x3e4] ss:$16 sps:$4 sm:$0xff]  }
  0xd3   :  { %1718 = vmatpush1.bf16.msra.mxu0 %v3827_v36  ;;  %v3973_v36 = vld [vmem:[%s5375_s3 + $0x3c4] ss:$16 sps:$4 sm:$0xff]  }
  0xd4   :  { %1693 = vmatpush2.bf16.msra.mxu1 %v3824_v34  ;;  %1719 = vmatprep.subr.bf16.mxu0 %v3835_v38  ;;  %v3886_v34 = vld [vmem:[%s5375_s3 + $0x164] ss:$16 sps:$4 sm:$0xff]   ;;  %v3971_v38 = vld [vmem:[%s5375_s3 + $0x3c0] ss:$16 sps:$4 sm:$0xff]  }
  0xd5   :  { %1694 = vmatprep.subr.bf16.mxu1 %v3832_v37  ;;  %v3884_v37 = vld [vmem:[%s5375_s3 + $0x160] ss:$16 sps:$4 sm:$0xff]  }
  0xd7   :  { %1720 = vmatpush1.bf16.msra.mxu0 %v3833_v40  ;;  %v3976_v40 = vld [vmem:[%s5375_s3 + $0x3a4] ss:$16 sps:$4 sm:$0xff]  }
  0xd8   :  { %1695 = vmatpush2.bf16.msra.mxu1 %v3830_v39  ;;  %1721 = vmatprep.subr.bf16.mxu0 %v3841_v42  ;;  %v3889_v39 = vld [vmem:[%s5375_s3 + $0x144] ss:$16 sps:$4 sm:$0xff]   ;;  %v3974_v42 = vld [vmem:[%s5375_s3 + $0x3a0] ss:$16 sps:$4 sm:$0xff]  }
  0xd9   :  { %1696 = vmatprep.subr.bf16.mxu1 %v3838_v41  ;;  %v3887_v41 = vld [vmem:[%s5375_s3 + $0x140] ss:$16 sps:$4 sm:$0xff]  }
  0xdb   :  { %1722 = vmatpush1.bf16.msra.mxu0 %v3839_v45  ;;  %v3979_v45 = vld [vmem:[%s5375_s3 + $0x384] ss:$16 sps:$4 sm:$0xff]  }
  0xdc   :  { %1697 = vmatpush2.bf16.msra.mxu1 %v3836_v43  ;;  %1723 = vmatprep.subr.bf16.mxu0 %v3847_v48  ;;  %v3892_v43 = vld [vmem:[%s5375_s3 + $0x124] ss:$16 sps:$4 sm:$0xff]   ;;  %v3977_v48 = vld [vmem:[%s5375_s3 + $0x380] ss:$16 sps:$4 sm:$0xff]  }
  0xdd   :  { %1698 = vmatprep.subr.bf16.mxu1 %v3844_v46  ;;  %v3890_v46 = vld [vmem:[%s5375_s3 + $0x120] ss:$16 sps:$4 sm:$0xff]  }
  0xdf   :  { %1724 = vmatpush1.bf16.msra.mxu0 %v3845_v50  ;;  %v3982_v50 = vld [vmem:[%s5375_s3 + $0x364] ss:$16 sps:$4 sm:$0xff]  }
  0xe0   :  { %1699 = vmatpush2.bf16.msra.mxu1 %v3842_v49  ;;  %2548 = vmatprep.subr.bf16.mxu0 %v3850_v52  ;;  %v3895_v49 = vld [vmem:[%s5375_s3 + $0x104] ss:$16 sps:$4 sm:$0xff]   ;;  %v3893_v52 = vld [vmem:[%s5375_s3 + $0x100] ss:$16 sps:$4 sm:$0xff]  }
  0xe1   :  { %2589 = vmatprep.subr.bf16.mxu1 %v3922_v58 }
  0xe2   :  { %1742 = vmatmul.mubr.bf16.vlgmr.msra.gmra.mxu0 %v4442_v44  ;;  %v3859_v44 = vld [vmem:[%s5375_s3 + $0x84] ss:$16 sps:$4 sm:$0xff]  }
  0xe3   :  { %1701 = vmatmul.mubr.bf16.vlgmr.msra.gmra.mxu1 %v4541_v15  ;;  %2549 = vmatpush1.bf16.msra.mxu0 %v3848_v53  ;;  %v3857_v15 = vld [vmem:[%s5375_s3 + $0x80] ss:$16 sps:$4 sm:$0xff]  }
  0xe4   :  { %2550 = vmatprep.subr.bf16.mxu0 %v3853_v54  ;;  %2590 = vmatpush1.bf16.msra.mxu1 %v3920_v57  ;;  %v3980_v53 = vld [vmem:[%s5375_s3 + $0x360] ss:$16 sps:$4 sm:$0xff]   ;;  %v3898_v54 = vld [vmem:[%s5375_s3 + $0xec] ss:$16 sps:$4 sm:$0xff]  }
  0xe5   :  { %2591 = vmatprep.subr.bf16.mxu1 %v3928_v61  ;;  %v3986_v57 = vld [vmem:[%s5375_s3 + $0x320] ss:$16 sps:$4 sm:$0xff]   ;;  %v3994_v61 = vld [vmem:[%s5375_s3 + $0x2ec] ss:$16 sps:$4 sm:$0xff]  }
  0xe7   :  { %2551 = vmatpush1.bf16.msra.mxu0 %v3851_v55  ;;  %v3985_v55 = vld [vmem:[%s5375_s3 + $0x344] ss:$16 sps:$4 sm:$0xff]  }
  0xe8   :  { %2552 = vmatprep.subr.bf16.mxu0 %v3856_v56  ;;  %2592 = vmatpush1.bf16.msra.mxu1 %v3926_v60  ;;  %v3983_v56 = vld [vmem:[%s5375_s3 + $0x340] ss:$16 sps:$4 sm:$0xff]  }
  0xe9   :  { %2593 = vmatprep.subr.bf16.mxu1 %v3934_v0  ;;  %v3989_v60 = vld [vmem:[%s5375_s3 + $0x300] ss:$16 sps:$4 sm:$0xff]  }
  0xea   :  { %v5045_v0 = vld [vmem:[%s5376_s2] sm:$0xf] }
  0xeb   :  { %2553 = vmatpush1.bf16.msra.mxu0 %v3854_v47 }
  0xec   :  { %2554 = vmatprep.subr.bf16.mxu0 %v3859_v44  ;;  %2594 = vmatpush1.bf16.msra.mxu1 %v3932_v63 }
  0xed   :  { %2595 = vmatprep.subr.bf16.mxu1 %v3940_v4 }
  0xef   :  { %2555 = vmatpush1.bf16.msra.mxu0 %v3857_v15  ;;  %v3988_v15 = vld [vmem:[%s5375_s3 + $0x324] ss:$16 sps:$4 sm:$0xff]  }
  0xf0   :  { %2556 = vmatprep.subr.bf16.mxu0 %v3862_v59  ;;  %2596 = vmatpush1.bf16.msra.mxu1 %v3938_v3 }
  0xf1   :  { %2597 = vmatprep.subr.bf16.mxu1 %v3946_v10 }
  0xf3   :  { %2557 = vmatpush1.bf16.msra.mxu0 %v3860_v6  ;;  %v3991_v6 = vld [vmem:[%s5375_s3 + $0x304] ss:$16 sps:$4 sm:$0xff]  }
  0xf4   :  { %2558 = vmatprep.subr.bf16.mxu0 %v3865_v35  ;;  %2598 = vmatpush1.bf16.msra.mxu1 %v3944_v9  ;;  %v257_v35 = vlaneseq }
  0xf5   :  { %2599 = vmatprep.subr.bf16.mxu1 %v3952_v14 }
  0xf7   :  { %2559 = vmatpush1.bf16.msra.mxu0 %v3863_v62  ;;  %v5039_v62 = vshrl.u32 %v257_v35, 7 }
  0xf8   :  { %2560 = vmatprep.subr.bf16.mxu0 %v3868_v1  ;;  %2600 = vmatpush1.bf16.msra.mxu1 %v3950_v13 }
  0xf9   :  { %2601 = vmatprep.subr.bf16.mxu1 %v3958_v24  ;;  %v259_v63 = vsub.s32 0, %v5039_v62  ;;  %v263_v1 = vsub.s32 1, %v5039_v62 }
  0xfb   :  { %2561 = vmatpush1.bf16.msra.mxu0 %v3866_v2  ;;  %v260_v2 = vrot.slane %v5045_v0, %v259_v63  ;;  %v264_v3 = vrot.slane %v5045_v0, %v263_v1 }
  0xfc   :  { %2562 = vmatprep.subr.bf16.mxu0 %v3871_v5  ;;  %2602 = vmatpush1.bf16.msra.mxu1 %v3956_v25 }
  0xfd   :  { %2603 = vmatprep.subr.bf16.mxu1 %v3964_v31  ;;  %v3913_v31 = vld [vmem:[%s5375_s3 + $0x4c] ss:$16 sps:$4 sm:$0xff]  }
  0xff   :  { %2563 = vmatpush1.bf16.msra.mxu0 %v3869_v8 }
 0x100   :  { %2564 = vmatprep.subr.bf16.mxu0 %v3874_v11  ;;  %2604 = vmatpush1.bf16.msra.mxu1 %v3962_v30  ;;  %v3908_v30 = vld [vmem:[%s5375_s3 + $0x68] ss:$16 sps:$4 sm:$0xff]  }
 0x101   :  { %2605 = vmatprep.subr.bf16.mxu1 %v3970_v33 }
 0x102   :  { %v4926_v18 = vpop.f32.mrf.mxu0 }
 0x103   :  { %v4928_v19 = vpop.f32.mrf.mxu1  ;;  %2565 = vmatpush2.bf16.msra.mxu0 %v3872_v12  ;;  %v1457_v4 = vadd.f32 %v4926_v18, %v260_v2  ;;  %v3896_v18 = vld [vmem:[%s5375_s3 + $0xe8] ss:$16 sps:$4 sm:$0xff]  }
 0x104   :  { %v4933_v21 = vpop.f32.mrf.mxu0  ;;  %2566 = vmatprep.subr.bf16.mxu0 %v3877_v17  ;;  %2606 = vmatpush2.bf16.msra.mxu1 %v3968_v32  ;;  %v3916_v32 = vld [vmem:[%s5375_s3 + $0x2c] ss:$16 sps:$4 sm:$0xff]  }
 0x105   :  { %v4935_v22 = vpop.f32.mrf.mxu1  ;;  %2607 = vmatprep.subr.bf16.mxu1 %v3973_v36  ;;  %v1459_v5 = vadd.f32 %v4933_v21, %v264_v3  ;;  %v1498_v8 = vadd.f32 %v4928_v19, %v1457_v4  ;;  %v3901_v19 = vld [vmem:[%s5375_s3 + $0xcc] ss:$16 sps:$4 sm:$0xff]  }
 0x106   :  { %v1460_v26 = vpop.f32.mrf.mxu0 }
 0x107   :  { %v1501_v27 = vpop.f32.mrf.mxu1  ;;  %2567 = vmatpush2.bf16.msra.mxu0 %v3875_v20  ;;  %v1500_v10 = vadd.f32 %v4935_v22, %v1459_v5  ;;  %v3899_v22 = vld [vmem:[%s5375_s3 + $0xc8] ss:$16 sps:$4 sm:$0xff]  }
 0x108   :  { %v1461_v28 = vpop.f32.mrf.mxu0  ;;  %2568 = vmatprep.subr.bf16.mxu0 %v3880_v23  ;;  %2608 = vmatpush2.bf16.msra.mxu1 %v3971_v38  ;;  %v3904_v27 = vld [vmem:[%s5375_s3 + $0xac] ss:$16 sps:$4 sm:$0xff]  }
 0x109   :  { %v1502_v7 = vpop.f32.mrf.mxu1  ;;  %2609 = vmatprep.subr.bf16.mxu1 %v3976_v40  ;;  %v3907_v28 = vld [vmem:[%s5375_s3 + $0x8c] ss:$16 sps:$4 sm:$0xff]  }
 0x10a   :  { %v3905_v7 = vld [vmem:[%s5375_s3 + $0x88] ss:$16 sps:$4 sm:$0xff]  }
 0x10b   :  { %2569 = vmatpush2.bf16.msra.mxu0 %v3878_v51  ;;  %v3902_v51 = vld [vmem:[%s5375_s3 + $0xa8] ss:$16 sps:$4 sm:$0xff]  }
 0x10c   :  { %2570 = vmatprep.subr.bf16.mxu0 %v3883_v29  ;;  %2610 = vmatpush2.bf16.msra.mxu1 %v3974_v42  ;;  %v3910_v29 = vld [vmem:[%s5375_s3 + $0x6c] ss:$16 sps:$4 sm:$0xff]   ;;  %v3923_v42 = vld [vmem:[%s5375_s3 + $0x1e8] ss:$16 sps:$4 sm:$0xff]  }
 0x10d   :  { %2611 = vmatprep.subr.bf16.mxu1 %v3979_v45  ;;  %v3929_v45 = vld [vmem:[%s5375_s3 + $0x1c8] ss:$16 sps:$4 sm:$0xff]  }
 0x10f   :  { %2571 = vmatpush2.bf16.msra.mxu0 %v3881_v16  ;;  %v3911_v16 = vld [vmem:[%s5375_s3 + $0x48] ss:$16 sps:$4 sm:$0xff]  }
 0x110   :  { %2572 = vmatprep.subr.bf16.mxu0 %v3886_v34  ;;  %2612 = vmatpush2.bf16.msra.mxu1 %v3977_v48  ;;  %v3914_v34 = vld [vmem:[%s5375_s3 + $0x28] ss:$16 sps:$4 sm:$0xff]  }
 0x111   :  { %2613 = vmatprep.subr.bf16.mxu1 %v3982_v50  ;;  %v3935_v48 = vld [vmem:[%s5375_s3 + $0x1a8] ss:$16 sps:$4 sm:$0xff]  }
 0x112   :  { %v3941_v50 = vld [vmem:[%s5375_s3 + $0x188] ss:$16 sps:$4 sm:$0xff]  }
 0x113   :  { %2573 = vmatpush2.bf16.msra.mxu0 %v3884_v37  ;;  %v3919_v37 = vld [vmem:[%s5375_s3 + $0xc] ss:$16 sps:$4 sm:$0xff]  }
 0x114   :  { %2574 = vmatprep.subr.bf16.mxu0 %v3889_v39  ;;  %2614 = vmatpush2.bf16.msra.mxu1 %v3980_v53  ;;  %v3917_v39 = vld [vmem:[%s5375_s3 + $0x8] ss:$16 sps:$4 sm:$0xff]  }
 0x115   :  { %2615 = vmatprep.subr.bf16.mxu1 %v3985_v55  ;;  %v3947_v53 = vld [vmem:[%s5375_s3 + $0x168] ss:$16 sps:$4 sm:$0xff]  }
 0x116   :  { %v3953_v55 = vld [vmem:[%s5375_s3 + $0x148] ss:$16 sps:$4 sm:$0xff]  }
 0x117   :  { %2575 = vmatpush2.bf16.msra.mxu0 %v3887_v41  ;;  %v3925_v41 = vld [vmem:[%s5375_s3 + $0x1ec] ss:$16 sps:$4 sm:$0xff]  }
 0x118   :  { %2576 = vmatprep.subr.bf16.mxu0 %v3892_v43  ;;  %2616 = vmatpush2.bf16.msra.mxu1 %v3983_v56  ;;  %v3931_v43 = vld [vmem:[%s5375_s3 + $0x1cc] ss:$16 sps:$4 sm:$0xff]  }
 0x119   :  { %2617 = vmatprep.subr.bf16.mxu1 %v3988_v15  ;;  %v3961_v56 = vld [vmem:[%s5375_s3 + $0x12c] ss:$16 sps:$4 sm:$0xff]  }
 0x11b   :  { %2577 = vmatpush2.bf16.msra.mxu0 %v3890_v46  ;;  %v3937_v46 = vld [vmem:[%s5375_s3 + $0x1ac] ss:$16 sps:$4 sm:$0xff]  }
 0x11c   :  { %2578 = vmatprep.subr.bf16.mxu0 %v3895_v49  ;;  %2618 = vmatpush2.bf16.msra.mxu1 %v3986_v57  ;;  %v3943_v49 = vld [vmem:[%s5375_s3 + $0x18c] ss:$16 sps:$4 sm:$0xff]  }
 0x11d   :  { %2619 = vmatprep.subr.bf16.mxu1 %v3991_v6  ;;  %v3967_v57 = vld [vmem:[%s5375_s3 + $0x10c] ss:$16 sps:$4 sm:$0xff]  }
 0x11f   :  { %2579 = vmatpush2.bf16.msra.mxu0 %v3893_v52  ;;  %v3949_v52 = vld [vmem:[%s5375_s3 + $0x16c] ss:$16 sps:$4 sm:$0xff]  }
 0x120   :  { %2630 = vmatprep.subr.bf16.mxu0 %v3898_v54  ;;  %2620 = vmatpush2.bf16.msra.mxu1 %v3989_v60  ;;  %v3955_v54 = vld [vmem:[%s5375_s3 + $0x14c] ss:$16 sps:$4 sm:$0xff]   ;;  %v267_v60 = vsub.s32 2, %v5039_v62 }
 0x121   :  { %2671 = vmatprep.subr.bf16.mxu1 %v3994_v61  ;;  %v271_v61 = vsub.s32 3, %v5039_v62 }
 0x122   :  { %v268_v35 = vrot.slane %v5045_v0, %v267_v60 }
 0x123   :  { %v1579_v47 = vpop.f32.mrf.mxu1  ;;  %v272_v2 = vrot.slane %v5045_v0, %v271_v61  ;;  %v3992_v0 = vld [vmem:[%s5375_s3 + $0x2e8] ss:$16 sps:$4 sm:$0xff]  }
 0x125   :  { %v1581_v44 = vpop.f32.mrf.mxu1 }
 0x127   :  { %v1583_v58 = vpop.f32.mrf.mxu1 }
 0x129   :  { %v1584_v59 = vpop.f32.mrf.mxu1 }
 0x12a   :  { %v3965_v59 = vld [vmem:[%s5375_s3 + $0x108] ss:$16 sps:$4 sm:$0xff]  }
 0x142   :  { %v1538_v9 = vpop.f32.mrf.mxu0 }
 0x143   :  { %v1539_v11 = vadd.f32 %v1538_v9, %v1498_v8 }
 0x144   :  { %v1540_v12 = vpop.f32.mrf.mxu0 }
 0x145   :  { %v1580_v13 = vadd.f32 %v1579_v47, %v1539_v11  ;;  %v1541_v14 = vadd.f32 %v1540_v12, %v1500_v10 }
 0x146   :  { %v1542_v17 = vpop.f32.mrf.mxu0 }
 0x147   :  { %v1582_v20 = vadd.f32 %v1581_v44, %v1541_v14  ;;  %v1750_v23 = vmax.f32 %v1580_v13, 0.0  ;;  %v3959_v44 = vld [vmem:[%s5375_s3 + $0x128] ss:$16 sps:$4 sm:$0xff]  }
 0x148   :  { %v1543_v24 = vpop.f32.mrf.mxu0 }
 0x149   :  { %v1751_v25 = vmax.f32 %v1582_v20, 0.0  ;;  %v5061_v21 = vpack.c.bf16 %v1750_v23, %v1750_v23 }
 0x14b   :  { %v1755_v26 = vpack.c.bf16 %v1751_v25, %v1751_v25 }
 0x14d   :  { %2580 = vmatprep.mubr.bf16.mxu0 %v1755_v26 }
 0x14e   :  { %2581 = vmatmul.mubr.bf16.vlgmr.msra.gmra.mxu0 %v5061_v21 }
 0x14f   :  { %2631 = vmatpush1.bf16.msra.mxu0 %v3896_v18  ;;  %2662 = vmatprep.mubr.bf16.mxu0 %v1755_v26 }
 0x150   :  { %2632 = vmatprep.subr.bf16.mxu0 %v3901_v19 }
 0x153   :  { %2633 = vmatpush1.bf16.msra.mxu0 %v3899_v22 }
 0x154   :  { %2634 = vmatprep.subr.bf16.mxu0 %v3904_v27  ;;  %v3997_v27 = vld [vmem:[%s5375_s3 + $0x2cc] ss:$16 sps:$4 sm:$0xff]  }
 0x157   :  { %2635 = vmatpush1.bf16.msra.mxu0 %v3902_v51  ;;  %v3995_v51 = vld [vmem:[%s5375_s3 + $0x2c8] ss:$16 sps:$4 sm:$0xff]  }
 0x158   :  { %2636 = vmatprep.subr.bf16.mxu0 %v3907_v28  ;;  %v4000_v28 = vld [vmem:[%s5375_s3 + $0x2ac] ss:$16 sps:$4 sm:$0xff]  }
 0x15b   :  { %2637 = vmatpush1.bf16.msra.mxu0 %v3905_v7  ;;  %v3998_v7 = vld [vmem:[%s5375_s3 + $0x2a8] ss:$16 sps:$4 sm:$0xff]  }
 0x15c   :  { %2638 = vmatprep.subr.bf16.mxu0 %v3910_v29  ;;  %v4003_v29 = vld [vmem:[%s5375_s3 + $0x28c] ss:$16 sps:$4 sm:$0xff]  }
 0x15f   :  { %2639 = vmatpush1.bf16.msra.mxu0 %v3908_v30  ;;  %v4001_v30 = vld [vmem:[%s5375_s3 + $0x288] ss:$16 sps:$4 sm:$0xff]  }
 0x160   :  { %2640 = vmatprep.subr.bf16.mxu0 %v3913_v31  ;;  %v4006_v31 = vld [vmem:[%s5375_s3 + $0x26c] ss:$16 sps:$4 sm:$0xff]  }
 0x163   :  { %v1620_v33 = vpop.f32.mrf.mxu1  ;;  %2641 = vmatpush1.bf16.msra.mxu0 %v3911_v16  ;;  %v4004_v16 = vld [vmem:[%s5375_s3 + $0x268] ss:$16 sps:$4 sm:$0xff]  }
 0x164   :  { %2642 = vmatprep.subr.bf16.mxu0 %v3916_v32  ;;  %v1621_v3 = vadd.f32 %v1620_v33, %v268_v35  ;;  %v4009_v32 = vld [vmem:[%s5375_s3 + $0x24c] ss:$16 sps:$4 sm:$0xff]   ;;  %v4007_v33 = vld [vmem:[%s5375_s3 + $0x248] ss:$16 sps:$4 sm:$0xff]  }
 0x165   :  { %v1622_v36 = vpop.f32.mrf.mxu1  ;;  %v4034_v35 = vld [vmem:[%s5375_s3 + $0x328] ss:$16 sps:$4 sm:$0xff]  }
 0x166   :  { %v1623_v4 = vadd.f32 %v1622_v36, %v272_v2  ;;  %v4010_v36 = vld [vmem:[%s5375_s3 + $0x228] ss:$16 sps:$4 sm:$0xff]   ;;  %v4039_v2 = vld [vmem:[%s5375_s3 + $0x30c] ss:$16 sps:$4 sm:$0xff]  }
 0x167   :  { %v1624_v38 = vpop.f32.mrf.mxu1  ;;  %2643 = vmatpush1.bf16.msra.mxu0 %v3914_v34  ;;  %v4012_v34 = vld [vmem:[%s5375_s3 + $0x22c] ss:$16 sps:$4 sm:$0xff]  }
 0x168   :  { %2644 = vmatprep.subr.bf16.mxu0 %v3919_v37  ;;  %v4015_v37 = vld [vmem:[%s5375_s3 + $0x20c] ss:$16 sps:$4 sm:$0xff]   ;;  %v4013_v38 = vld [vmem:[%s5375_s3 + $0x208] ss:$16 sps:$4 sm:$0xff]  }
 0x169   :  { %v1625_v40 = vpop.f32.mrf.mxu1 }
 0x16a   :  { %v4016_v40 = vld [vmem:[%s5375_s3 + $0x3e8] ss:$16 sps:$4 sm:$0xff]  }
 0x16b   :  { %2645 = vmatpush1.bf16.msra.mxu0 %v3917_v39  ;;  %v4018_v39 = vld [vmem:[%s5375_s3 + $0x3ec] ss:$16 sps:$4 sm:$0xff]  }
 0x16c   :  { %2646 = vmatprep.subr.bf16.mxu0 %v3925_v41  ;;  %v4021_v41 = vld [vmem:[%s5375_s3 + $0x3cc] ss:$16 sps:$4 sm:$0xff]  }
 0x16f   :  { %2647 = vmatpush2.bf16.msra.mxu0 %v3923_v42  ;;  %v4019_v42 = vld [vmem:[%s5375_s3 + $0x3c8] ss:$16 sps:$4 sm:$0xff]  }
 0x170   :  { %2648 = vmatprep.subr.bf16.mxu0 %v3931_v43  ;;  %v4024_v43 = vld [vmem:[%s5375_s3 + $0x3ac] ss:$16 sps:$4 sm:$0xff]  }
 0x173   :  { %2649 = vmatpush2.bf16.msra.mxu0 %v3929_v45  ;;  %v4022_v45 = vld [vmem:[%s5375_s3 + $0x3a8] ss:$16 sps:$4 sm:$0xff]  }
 0x174   :  { %2650 = vmatprep.subr.bf16.mxu0 %v3937_v46  ;;  %v4027_v46 = vld [vmem:[%s5375_s3 + $0x38c] ss:$16 sps:$4 sm:$0xff]  }
 0x177   :  { %2651 = vmatpush2.bf16.msra.mxu0 %v3935_v48  ;;  %v4025_v48 = vld [vmem:[%s5375_s3 + $0x388] ss:$16 sps:$4 sm:$0xff]  }
 0x178   :  { %2652 = vmatprep.subr.bf16.mxu0 %v3943_v49  ;;  %v4040_v49 = vld [vmem:[%s5377_s5 + $0x78] sm:$0xff]  }
 0x17b   :  { %2653 = vmatpush2.bf16.msra.mxu0 %v3941_v50  ;;  %v4030_v50 = vld [vmem:[%s5375_s3 + $0x36c] ss:$16 sps:$4 sm:$0xff]  }
 0x17c   :  { %2654 = vmatprep.subr.bf16.mxu0 %v3949_v52  ;;  %v4041_v52 = vld [vmem:[%s5377_s5 + $0x38] sm:$0xff]  }
 0x17f   :  { %2655 = vmatpush2.bf16.msra.mxu0 %v3947_v53  ;;  %v4042_v53 = vld [vmem:[%s5377_s5 + $0x70] sm:$0xff]  }
 0x180   :  { %2656 = vmatprep.subr.bf16.mxu0 %v3955_v54  ;;  %v4043_v54 = vld [vmem:[%s5377_s5 + $0x30] sm:$0xff]  }
 0x182   :  { %v1661_v47 = vpop.f32.mrf.mxu0 }
 0x183   :  { %2657 = vmatpush2.bf16.msra.mxu0 %v3953_v55  ;;  %v1662_v5 = vadd.f32 %v1661_v47, %v1621_v3  ;;  %v4044_v55 = vld [vmem:[%s5377_s5 + $0x68] sm:$0xff]   ;;  %v4049_v3 = vld [vmem:[%s5377_s5 + $0x18] sm:$0xff]  }
 0x184   :  { %v1663_v15 = vpop.f32.mrf.mxu0  ;;  %2658 = vmatprep.subr.bf16.mxu0 %v3961_v56  ;;  %v4028_v56 = vld [vmem:[%s5375_s3 + $0x368] ss:$16 sps:$4 sm:$0xff]   ;;  %v4033_v47 = vld [vmem:[%s5375_s3 + $0x34c] ss:$16 sps:$4 sm:$0xff]  }
 0x185   :  { %v1664_v10 = vadd.f32 %v1663_v15, %v1623_v4  ;;  %v4031_v15 = vld [vmem:[%s5375_s3 + $0x348] ss:$16 sps:$4 sm:$0xff]   ;;  %v4050_v4 = vld [vmem:[%s5377_s5 + $0x50] sm:$0xff]  }
 0x186   :  { %v1665_v58 = vpop.f32.mrf.mxu0 }
 0x187   :  { %2659 = vmatpush2.bf16.msra.mxu0 %v3959_v44  ;;  %v4045_v44 = vld [vmem:[%s5377_s5 + $0x28] sm:$0xff]  }
 0x188   :  { %v1666_v6 = vpop.f32.mrf.mxu0  ;;  %2660 = vmatprep.subr.bf16.mxu0 %v3967_v57  ;;  %v4046_v57 = vld [vmem:[%s5377_s5 + $0x60] sm:$0xff]   ;;  %v4036_v58 = vld [vmem:[%s5375_s3 + $0x32c] ss:$16 sps:$4 sm:$0xff]  }
 0x189   :  { %v4048_v6 = vld [vmem:[%s5377_s5 + $0x58] sm:$0xff]  }
 0x18b   :  { %2661 = vmatpush2.bf16.msra.mxu0 %v3965_v59  ;;  %v4047_v59 = vld [vmem:[%s5377_s5 + $0x20] sm:$0xff]  }
 0x18c   :  { %3460 = vmatprep.subr.bf16.mxu0 %v4040_v49 }
 0x18e   :  { %2663 = vmatmul.mubr.bf16.vlgmr.msra.gmra.mxu0 %v5061_v21 }
 0x18f   :  { %3461 = vmatpush3.bf16.msra.mxu0 %v4041_v52 }
 0x190   :  { %3462 = vmatprep.subr.bf16.mxu0 %v4042_v53 }
 0x193   :  { %3463 = vmatpush3.bf16.msra.mxu0 %v4043_v54 }
 0x194   :  { %3464 = vmatprep.subr.bf16.mxu0 %v4044_v55 }
 0x197   :  { %3465 = vmatpush3.bf16.msra.mxu0 %v4045_v44 }
 0x198   :  { %3466 = vmatprep.subr.bf16.mxu0 %v4046_v57 }
 0x19b   :  { %3467 = vmatpush3.bf16.msra.mxu0 %v4047_v59 }
 0x19c   :  { %3468 = vmatprep.subr.bf16.mxu0 %v4048_v6 }
 0x19f   :  { %3469 = vmatpush3.bf16.msra.mxu0 %v4049_v3 }
 0x1a0   :  { %3470 = vmatprep.subr.bf16.mxu0 %v4050_v4 }
 0x1a2   :  { %v1743_v9 = vpop.f32.mrf.mxu0 }
 0x1a3   :  { %v1702_v8 = vpop.f32.mrf.mxu1 }
 0x1a4   :  { %v1703_v11 = vadd.f32 %v1702_v8, %v1662_v5  ;;  %v1745_v13 = vpop.f32.mrf.mxu0  ;;  %v4037_v5 = vld [vmem:[%s5375_s3 + $0x308] ss:$16 sps:$4 sm:$0xff]   ;;  %v4051_v8 = vld [vmem:[%s5377_s5 + $0x10] sm:$0xff]  }
 0x1a5   :  { %v1704_v12 = vpop.f32.mrf.mxu1  ;;  %3471 = vmatpush3.bf16.msra.mxu0 %v4051_v8 }
 0x1a6   :  { %v1744_v14 = vadd.f32 %v1743_v9, %v1703_v11  ;;  %v1705_v17 = vadd.f32 %v1704_v12, %v1664_v10  ;;  %v1747_v23 = vpop.f32.mrf.mxu0  ;;  %v4052_v9 = vld [vmem:[%s5377_s5 + $0x48] sm:$0xff]   ;;  %v4054_v11 = vld [vmem:[%s5377_s5 + $0x40] sm:$0xff]  }
 0x1a7   :  { %v1706_v20 = vpop.f32.mrf.mxu1  ;;  %v4053_v10 = vld [vmem:[%s5377_s5 + $0x8] sm:$0xff]   ;;  %3472 = vmatprep.subr.bf16.mxu0 %v4052_v9  ;;  %v4055_v12 = vld [vmem:[%s5377_s5] sm:$0xff]  }
 0x1a8   :  { %v1746_v24 = vadd.f32 %v1745_v13, %v1705_v17  ;;  %v1752_v25 = vmax.f32 %v1744_v14, 0.0  ;;  %v1748_v18 = vpop.f32.mrf.mxu0  ;;  %v4056_v13 = vld [vmem:[%s5377_s5 + $0xf8] sm:$0xff]   ;;  %v4058_v17 = vld [vmem:[%s5377_s5 + $0xf0] sm:$0xff]   ;;  %v4060_v23 = vld [vmem:[%s5377_s5 + $0xe8] sm:$0xff]  }
 0x1a9   :  { %v1707_v26 = vpop.f32.mrf.mxu1  ;;  %3473 = vmatpush3.bf16.msra.mxu0 %v4053_v10  ;;  %v4057_v14 = vld [vmem:[%s5377_s5 + $0xb8] sm:$0xff]   ;;  %v4059_v20 = vld [vmem:[%s5377_s5 + $0xb0] sm:$0xff]  }
 0x1aa   :  { %v1753_v21 = vmax.f32 %v1746_v24, 0.0  ;;  %v5166_v22 = vpack.c.bf16 %v1752_v25, %v1752_v25  ;;  %3474 = vmatprep.subr.bf16.mxu0 %v4054_v11  ;;  %v4061_v24 = vld [vmem:[%s5377_s5 + $0xa8] sm:$0xff]   ;;  %v4062_v25 = vld [vmem:[%s5377_s5 + $0xe0] sm:$0xff]   ;;  %v4064_v18 = vld [vmem:[%s5377_s5 + $0xd8] sm:$0xff]  }
 0x1ab   :  { %v4063_v26 = vld [vmem:[%s5377_s5 + $0xa0] sm:$0xff]  }
 0x1ac   :  { %v1757_v19 = vpack.c.bf16 %v1753_v21, %v1753_v21  ;;  %v4065_v21 = vld [vmem:[%s5377_s5 + $0x98] sm:$0xff]  }
 0x1ad   :  { %3475 = vmatpush3.bf16.msra.mxu0 %v4055_v12 }
 0x1ae   :  { %2621 = vmatprep.mubr.bf16.mxu1 %v1757_v19 }
 0x1af   :  { %2622 = vmatmul.mubr.bf16.vlgmr.msra.gmra.mxu1 %v5166_v22 }
 0x1b0   :  { %2672 = vmatpush1.bf16.msra.mxu1 %v3992_v0  ;;  %2703 = vmatprep.mubr.bf16.mxu1 %v1757_v19  ;;  %v4066_v19 = vld [vmem:[%s5377_s5 + $0xd0] sm:$0xff]  }
 0x1b1   :  { %2673 = vmatprep.subr.bf16.mxu1 %v3997_v27  ;;  %v4067_v0 = vld [vmem:[%s5377_s5 + $0x90] sm:$0xff]  }
 0x1b4   :  { %2674 = vmatpush1.bf16.msra.mxu1 %v3995_v51 }
 0x1b5   :  { %2675 = vmatprep.subr.bf16.mxu1 %v4000_v28 }
 0x1b8   :  { %2676 = vmatpush1.bf16.msra.mxu1 %v3998_v7  ;;  %v4068_v7 = vld [vmem:[%s5377_s5 + $0xc8] sm:$0xff]  }
 0x1b9   :  { %2677 = vmatprep.subr.bf16.mxu1 %v4003_v29  ;;  %v4069_v29 = vld [vmem:[%s5377_s5 + $0x88] sm:$0xff]  }
 0x1bc   :  { %2678 = vmatpush1.bf16.msra.mxu1 %v4001_v30  ;;  %v4070_v30 = vld [vmem:[%s5377_s5 + $0xc0] sm:$0xff]  }
 0x1bd   :  { %2679 = vmatprep.subr.bf16.mxu1 %v4006_v31  ;;  %v4071_v31 = vld [vmem:[%s5377_s5 + $0x80] sm:$0xff]  }
 0x1c0   :  { %2680 = vmatpush1.bf16.msra.mxu1 %v4004_v16 }
 0x1c1   :  { %2681 = vmatprep.subr.bf16.mxu1 %v4009_v32 }
 0x1c4   :  { %2682 = vmatpush1.bf16.msra.mxu1 %v4007_v33 }
 0x1c5   :  { %2683 = vmatprep.subr.bf16.mxu1 %v4012_v34 }
 0x1c8   :  { %2684 = vmatpush1.bf16.msra.mxu1 %v4010_v36  ;;  %v1886_v36 = vld [vmem:[%s5378_s4] sm:$0xf] }
 0x1c9   :  { %2685 = vmatprep.subr.bf16.mxu1 %v4015_v37  ;;  %v1891_v37 = vrot.slane %v1886_v36, %v259_v63  ;;  %v1899_v63 = vrot.slane %v1886_v36, %v267_v60 }
 0x1cc   :  { %2686 = vmatpush1.bf16.msra.mxu1 %v4013_v38  ;;  %v1895_v38 = vrot.slane %v1886_v36, %v263_v1  ;;  %v1903_v1 = vrot.slane %v1886_v36, %v271_v61  ;;  %v3427_v61 = vld [vmem:[%s5379_s6] ss:$0 sm:$0xff] }
 0x1cd   :  { %2687 = vmatprep.subr.bf16.mxu1 %v4018_v39 }
 0x1d0   :  { %2688 = vmatpush2.bf16.msra.mxu1 %v4016_v40 }
 0x1d1   :  { %2689 = vmatprep.subr.bf16.mxu1 %v4021_v41 }
 0x1d4   :  { %2690 = vmatpush2.bf16.msra.mxu1 %v4019_v42 }
 0x1d5   :  { %2691 = vmatprep.subr.bf16.mxu1 %v4024_v43 }
 0x1d8   :  { %2692 = vmatpush2.bf16.msra.mxu1 %v4022_v45 }
 0x1d9   :  { %2693 = vmatprep.subr.bf16.mxu1 %v4027_v46 }
 0x1dc   :  { %2694 = vmatpush2.bf16.msra.mxu1 %v4025_v48 }
 0x1dd   :  { %2695 = vmatprep.subr.bf16.mxu1 %v4030_v50 }
 0x1e0   :  { %2696 = vmatpush2.bf16.msra.mxu1 %v4028_v56 }
 0x1e1   :  { %2697 = vmatprep.subr.bf16.mxu1 %v4033_v47 }
 0x1e4   :  { %2698 = vmatpush2.bf16.msra.mxu1 %v4031_v15 }
 0x1e5   :  { %2699 = vmatprep.subr.bf16.mxu1 %v4036_v58 }
 0x1e8   :  { %2700 = vmatpush2.bf16.msra.mxu1 %v4034_v35 }
 0x1e9   :  { %2701 = vmatprep.subr.bf16.mxu1 %v4039_v2 }
 0x1ec   :  { %2702 = vmatpush2.bf16.msra.mxu1 %v4037_v5 }
 0x1ed   :  { %3482 = vmatprep.subr.bf16.mxu1 %v4056_v13 }
 0x1ef   :  { %2704 = vmatmul.mubr.bf16.vlgmr.msra.gmra.mxu1 %v5166_v22 }
 0x1f0   :  { %3483 = vmatpush3.bf16.msra.mxu1 %v4057_v14 }
 0x1f1   :  { %3484 = vmatprep.subr.bf16.mxu1 %v4058_v17 }
 0x1f4   :  { %3485 = vmatpush3.bf16.msra.mxu1 %v4059_v20 }
 0x1f5   :  { %3486 = vmatprep.subr.bf16.mxu1 %v4060_v23 }
 0x1f8   :  { %3487 = vmatpush3.bf16.msra.mxu1 %v4061_v24 }
 0x1f9   :  { %3488 = vmatprep.subr.bf16.mxu1 %v4062_v25 }
 0x1fc   :  { %3489 = vmatpush3.bf16.msra.mxu1 %v4063_v26 }
 0x1fd   :  { %3490 = vmatprep.subr.bf16.mxu1 %v4064_v18 }
 0x200   :  { %3491 = vmatpush3.bf16.msra.mxu1 %v4065_v21 }
 0x201   :  { %3492 = vmatprep.subr.bf16.mxu1 %v4066_v19 }
 0x204   :  { %3493 = vmatpush3.bf16.msra.mxu1 %v4067_v0 }
 0x205   :  { %3494 = vmatprep.subr.bf16.mxu1 %v4068_v7 }
 0x208   :  { %3495 = vmatpush3.bf16.msra.mxu1 %v4069_v29 }
 0x209   :  { %3496 = vmatprep.subr.bf16.mxu1 %v4070_v30 }
 0x20c   :  { %3497 = vmatpush3.bf16.msra.mxu1 %v4071_v31 }
 0x20e   :  { %v2582_v22 = vpop.f32.mrf.mxu0 }
 0x20f   :  { %v2583_v39 = vadd.f32 %v2582_v22, %v1891_v37 }
 0x210   :  { %v2584_v27 = vpop.f32.mrf.mxu0 }
 0x211   :  { %v2585_v41 = vadd.f32 %v2584_v27, %v1895_v38 }
 0x212   :  { %v2586_v51 = vpop.f32.mrf.mxu0 }
 0x214   :  { %v2587_v28 = vpop.f32.mrf.mxu0 }
 0x24e   :  { %v2664_v16 = vpop.f32.mrf.mxu0 }
 0x24f   :  { %v2665_v54 = vadd.f32 %v2664_v16, %v1899_v63 }
 0x250   :  { %v2666_v32 = vpop.f32.mrf.mxu0 }
 0x251   :  { %v2667_v56 = vadd.f32 %v2666_v32, %v1903_v1 }
 0x252   :  { %v2668_v33 = vpop.f32.mrf.mxu0 }
 0x254   :  { %v2669_v34 = vpop.f32.mrf.mxu0 }
 0x26f   :  { %v2623_v40 = vpop.f32.mrf.mxu1 }
 0x270   :  { %v2624_v42 = vadd.f32 %v2623_v40, %v2583_v39 }
 0x271   :  { %v2625_v43 = vpop.f32.mrf.mxu1 }
 0x272   :  { %v2626_v45 = vadd.f32 %v2625_v43, %v2585_v41  ;;  %v2712_v46 = vmax.f32 %v2624_v42, 0.0 }
 0x273   :  { %v2627_v48 = vpop.f32.mrf.mxu1 }
 0x274   :  { %v2713_v49 = vmax.f32 %v2626_v45, 0.0  ;;  %v2716_v53 = vpack.c.bf16 %v2712_v46, %v2712_v46 }
 0x275   :  { %v2628_v50 = vpop.f32.mrf.mxu1 }
 0x276   :  { %v2717_v52 = vpack.c.bf16 %v2713_v49, %v2713_v49 }
 0x278   :  { %3015 = vmatprep.mubr.bf16.mxu0 %v2717_v52 }
 0x279   :  { %3016 = vmatmul.mubr.bf16.vlgmr.msra.gmra.mxu0 %v2716_v53 }
 0x2af   :  { %v2705_v55 = vpop.f32.mrf.mxu1 }
 0x2b0   :  { %v2706_v47 = vadd.f32 %v2705_v55, %v2665_v54 }
 0x2b1   :  { %v2707_v44 = vpop.f32.mrf.mxu1 }
 0x2b2   :  { %v2708_v15 = vadd.f32 %v2707_v44, %v2667_v56  ;;  %v2714_v57 = vmax.f32 %v2706_v47, 0.0 }
 0x2b3   :  { %v2709_v58 = vpop.f32.mrf.mxu1 }
 0x2b4   :  { %v2715_v59 = vmax.f32 %v2708_v15, 0.0  ;;  %v2718_v2 = vpack.c.bf16 %v2714_v57, %v2714_v57 }
 0x2b5   :  { %v2710_v6 = vpop.f32.mrf.mxu1 }
 0x2b6   :  { %v2719_v35 = vpack.c.bf16 %v2715_v59, %v2715_v59 }
 0x2b8   :  { %3055 = vmatprep.mubr.bf16.mxu1 %v2719_v35 }
 0x2b9   :  { %3056 = vmatmul.mubr.bf16.vlgmr.msra.gmra.mxu1 %v2718_v2 }
 0x339   :  { %v3476_v3 = vpop.f32.mrf.mxu0 }
 0x33b   :  { %v3477_v4 = vpop.f32.mrf.mxu0 }
 0x33c   :  { %v3478_v62 = vadd.f32 %v3477_v4, %v3476_v3 }
 0x33d   :  { %v3479_v60 = vpop.f32.mrf.mxu0 }
 0x33e   :  { %v3018_v10 = vadd.f32 %v3478_v62, %v3427_v61 }
 0x33f   :  { %v3480_v5 = vpop.f32.mrf.mxu0 }
 0x379   :  { %v3498_v8 = vpop.f32.mrf.mxu1 }
 0x37b   :  { %v3499_v9 = vpop.f32.mrf.mxu1 }
 0x37c   :  { %v3500_v11 = vadd.f32 %v3499_v9, %v3498_v8 }
 0x37d   :  { %v3501_v12 = vpop.f32.mrf.mxu1 }
 0x37e   :  { %v3058_v13 = vadd.f32 %v3500_v11, %v3018_v10 }
 0x37f   :  { %v3502_v14 = vpop.f32.mrf.mxu1 }
 0x380   :  { %3063 = vst [vmem:[%s5380_s7] sm:$0xff] %v3058_v13 }

</bundles_post_ra>
